<compile_context>
chip_gen: v5e
topology: v5e:2x2
jax: 0.10.0
libtpu: 0.0.40
codegen_flags: <defaults>
</compile_context>

<pallas_src>
import numpy as np
import jax
import jax.numpy as jnp
from jax import lax
from jax.experimental import pallas as pl
from jax.experimental.pallas import tpu as pltpu

# ---- module hyper-parameters (globals / `params` of the reference script) ----
NUM_RX_ANTENNAS = 4
DENSE_SAMPLING_L = 32
GAUSSIAN_SAMPLING_STD = 4.0
NUM_OF_ADC_P = 4
NUM_SAMPLES_L_TILDE = 8
NUM_TRANSMITTED_SYMBOLS = 4
NUM_CODE_WORDS = 4
MAX_LABELS = 4.0
MAX_SAMPLES = 1.0

IN_FEAT = NUM_RX_ANTENNAS * DENSE_SAMPLING_L        # 128  (analog_filter input)
ANALOG_OUT = NUM_OF_ADC_P * DENSE_SAMPLING_L        # 128  (analog_filter output)
SAMPLED_FEAT = NUM_OF_ADC_P * NUM_SAMPLES_L_TILDE   # 32   (sampling layer output)
HIDDEN = 32                                         # fc1 output
OUT_DIM = 2 ** NUM_TRANSMITTED_SYMBOLS              # 16   (fc2 output)
NQ1 = NUM_CODE_WORDS - 1                            # 3    (number of tanh steps)

# A @ B^T contraction (PyTorch Linear weight layout (out, in)), no transpose op.
_TRANS_B = (((1,), (1,)), ((), ()))


def _adcnet_kernel(x_ref, was_ref, qp_ref, w1_ref, w2_ref, o_ref):
    """Fused ADCNet forward on one batch tile.

    x_ref   : (TB, IN_FEAT)              input rows
    was_ref : (IN_FEAT, SAMPLED_FEAT)    analog filter (+) Gaussian sampling,
                                         pre-folded into one matrix
    qp_ref  : (3, NQ1)                   quantization params, rows = (a, b, c)
    w1_ref  : (HIDDEN, SAMPLED_FEAT)     fc1 weight (PyTorch layout)
    w2_ref  : (OUT_DIM, HIDDEN)          fc2 weight (PyTorch layout)
    o_ref   : (TB, OUT_DIM)              output logits
    """
    f32 = jnp.float32
    x = x_ref[...]

    # 1)+2) Analog filter then Gaussian re-sampling: both linear, folded once
    #       (at parameter-prep time) into a single MXU matmul.
    s = jnp.dot(x, was_ref[...], preferred_element_type=f32)

    # 3) Soft quantization: z = sum_i a_i * tanh(c_i * (s - b_i))  (EUP tanh).
    qp = qp_ref[...]                       # (3, NQ1)
    z = jnp.zeros_like(s)
    for i in range(NQ1):                   # NQ1 = 3, static -> fully unrolled
        a_i = qp[0:1, i:i + 1]
        b_i = qp[1:2, i:i + 1]
        c_i = qp[2:3, i:i + 1]
        z = z + a_i * jnp.tanh(c_i * (s - b_i))

    # 4) Digital network: relu(fc1) -> fc2 (both bias-free, MXU + VPU relu).
    h = lax.dot_general(z, w1_ref[...], _TRANS_B, preferred_element_type=f32)
    h = jnp.maximum(h, 0.0)
    out = lax.dot_general(h, w2_ref[...], _TRANS_B, preferred_element_type=f32)

    o_ref[...] = out.astype(o_ref.dtype)


def _round_up(x, m):
    return (x + m - 1) // m * m


def make_sampling_matrix(samp_weights, dense_l=DENSE_SAMPLING_L,
                         num_adc=NUM_OF_ADC_P, std=GAUSSIAN_SAMPLING_STD):
    """Block-diagonal Gaussian basis equivalent to SamplingLayer.forward's
    double loop (built once, at parameter-prep time, in float64)."""
    t = np.arange(1, dense_l + 1, dtype=np.float64)                   # (L,)
    w = np.asarray(samp_weights, np.float64)                          # (Lt,)
    gauss = np.exp(-(t[:, None] - w[None, :]) ** 2 / std ** 2)        # (L, Lt)
    return np.kron(np.eye(num_adc), gauss)                            # (P*L, P*Lt)


def fold_analog_and_sampling(w_analog, samp_weights):
    """Fold AnalogNetwork (x @ W_a^T) and SamplingLayer (y @ S) into one
    (IN_FEAT, SAMPLED_FEAT) matrix:  x @ (W_a^T @ S).  Done once in float64
    at parameter-prep time; mathematically identical forward pass."""
    wa = np.asarray(w_analog, np.float64)              # (ANALOG_OUT, IN_FEAT)
    samp = make_sampling_matrix(samp_weights)          # (ANALOG_OUT, SAMPLED_FEAT)
    return wa.T @ samp                                 # (IN_FEAT, SAMPLED_FEAT)


def adcnet_forward(x, w_analog_sampling, quant_params, w_fc1, w_fc2,
                   *, block_b=1024):
    """Fused ADCNet forward.

    x                 : (B, IN_FEAT)
    w_analog_sampling : (IN_FEAT, SAMPLED_FEAT)  from fold_analog_and_sampling
    quant_params      : (3, NQ1)                 rows = (a, b, c)
    w_fc1             : (HIDDEN, SAMPLED_FEAT)   PyTorch (out, in) layout
    w_fc2             : (OUT_DIM, HIDDEN)        PyTorch (out, in) layout
    block_b           : rows per batch tile (large tiles amortize the ~0.35 us
                        per-grid-step overhead; weights stay VMEM-resident)
    """
    x = jnp.asarray(x, jnp.float32)
    B = x.shape[0]

    tb = min(_round_up(block_b, 8), _round_up(B, 8))   # sublane-aligned tile
    b_pad = _round_up(B, tb)
    if b_pad != B:
        x = jnp.pad(x, ((0, b_pad - B), (0, 0)))
    grid = (b_pad // tb,)

    flops = 2 * b_pad * (IN_FEAT * SAMPLED_FEAT + SAMPLED_FEAT * HIDDEN
                         + HIDDEN * OUT_DIM)
    transcendentals = b_pad * SAMPLED_FEAT * NQ1
    bytes_accessed = 4 * (b_pad * (IN_FEAT + OUT_DIM)
                          + IN_FEAT * SAMPLED_FEAT + 3 * NQ1
                          + HIDDEN * SAMPLED_FEAT + OUT_DIM * HIDDEN)

    out = pl.pallas_call(
        _adcnet_kernel,
        out_shape=jax.ShapeDtypeStruct((b_pad, OUT_DIM), jnp.float32),
        grid=grid,
        in_specs=[
            # activations: tiled over the batch grid axis
            pl.BlockSpec((tb, IN_FEAT), lambda i: (i, 0)),
            # parameters: constant index_map -> DMA'd once, VMEM-resident
            pl.BlockSpec((IN_FEAT, SAMPLED_FEAT), lambda i: (0, 0)),
            pl.BlockSpec((3, NQ1), lambda i: (0, 0)),
            pl.BlockSpec((HIDDEN, SAMPLED_FEAT), lambda i: (0, 0)),
            pl.BlockSpec((OUT_DIM, HIDDEN), lambda i: (0, 0)),
        ],
        out_specs=pl.BlockSpec((tb, OUT_DIM), lambda i: (i, 0)),
        compiler_params=pltpu.CompilerParams(
            dimension_semantics=("parallel",),   # v7x: split batch tiles across TCs
        ),
        cost_estimate=pl.CostEstimate(
            flops=flops,
            transcendentals=transcendentals,
            bytes_accessed=bytes_accessed,
        ),
    )(x,
      jnp.asarray(w_analog_sampling, jnp.float32),
      jnp.asarray(quant_params, jnp.float32),
      jnp.asarray(w_fc1, jnp.float32),
      jnp.asarray(w_fc2, jnp.float32))

    return out[:B]


if __name__ == "__main__":
    key = jax.random.PRNGKey(0)
    k_x, k_wa, k_w1, k_w2 = jax.random.split(key, 4)

    batch = 512   # 2 batch tiles of 256 -> exercises the parallel grid axis

    # ---- parameter init (mirrors the PyTorch module init, done ONCE) -------
    bound_a = 1.0 / np.sqrt(IN_FEAT)
    w_analog = jax.random.uniform(k_wa, (ANALOG_OUT, IN_FEAT),
                                  minval=-bound_a, maxval=bound_a,
                                  dtype=jnp.float32)

    # SamplingLayer parameters -> fold analog filter + Gaussian basis once.
    samp_weights = np.linspace(0.0, DENSE_SAMPLING_L,
                               NUM_SAMPLES_L_TILDE + 2)[1:-1]          # (Lt,)
    w_as = fold_analog_and_sampling(np.asarray(w_analog), samp_weights)

    # QuantizationLayer parameters (a, b, c).
    q_a = np.ones(NQ1) * MAX_LABELS / NUM_CODE_WORDS
    q_b = np.linspace(-1.0, 1.0, NQ1) * MAX_SAMPLES
    q_c = 15.0 / np.mean(np.diff(q_b)) * np.ones(NQ1)
    quant_params = np.stack([q_a, q_b, q_c]).astype(np.float32)        # (3, NQ1)

    bound1 = 1.0 / np.sqrt(SAMPLED_FEAT)
    bound2 = 1.0 / np.sqrt(HIDDEN)
    w_fc1 = jax.random.uniform(k_w1, (HIDDEN, SAMPLED_FEAT),
                               minval=-bound1, maxval=bound1, dtype=jnp.float32)
    w_fc2 = jax.random.uniform(k_w2, (OUT_DIM, HIDDEN),
                               minval=-bound2, maxval=bound2, dtype=jnp.float32)

    x = jax.random.normal(k_x, (batch, IN_FEAT), dtype=jnp.float32)

    # ---- run the fused Pallas kernel ----------------------------------------
    out = adcnet_forward(x, w_as, quant_params, w_fc1, w_fc2, block_b=256)
    out = jax.block_until_ready(out)

    # ---- float64 numpy reference (mirrors the torch .double() forward) ------
    xn = np.asarray(x, np.float64)
    wan = np.asarray(w_analog, np.float64)
    w1n = np.asarray(w_fc1, np.float64)
    w2n = np.asarray(w_fc2, np.float64)
    t = np.arange(1, DENSE_SAMPLING_L + 1, dtype=np.float64)
    gauss = np.exp(-(t[:, None] - samp_weights[None, :]) ** 2
                   / GAUSSIAN_SAMPLING_STD ** 2)

    y1 = xn @ wan.T                                                    # analog
    samp = np.einsum(
        "bpl,lk->bpk",
        y1.reshape(batch, NUM_OF_ADC_P, DENSE_SAMPLING_L),
        gauss).reshape(batch, SAMPLED_FEAT)                            # sampling
    z = np.zeros_like(samp)
    for i in range(NQ1):                                               # quantize
        z += q_a[i] * np.tanh(q_c[i] * (samp - q_b[i]))
    h = np.maximum(z @ w1n.T, 0.0)                                     # fc1+relu
    ref = h @ w2n.T                                                    # fc2

    assert out.shape == (batch, OUT_DIM)
    err = float(np.max(np.abs(np.asarray(out, np.float64) - ref)))
    assert err < 5e-3, f"max abs err {err}"

    print("KERNEL_OK")
</pallas_src>

<mosaic_0001>
module attributes {stable_mosaic.version = 11 : i64} {
  func.func @_adcnet_kernel(%arg0: i32, %arg1: memref<256x128xf32, #tpu.memory_space<vmem>>, %arg2: memref<128x32xf32, #tpu.memory_space<vmem>>, %arg3: memref<3x3xf32, #tpu.memory_space<vmem>>, %arg4: memref<32x32xf32, #tpu.memory_space<vmem>>, %arg5: memref<16x32xf32, #tpu.memory_space<vmem>>, %arg6: memref<256x16xf32, #tpu.memory_space<vmem>>) attributes {dimension_semantics = [#tpu.dimension_semantics<parallel>], iteration_bounds = array<i64: 2>, scalar_prefetch = 0 : i64, scratch_operands = 0 : i64, tpu.core_type = #tpu.core_type<tc>, window_params = [{transform_indices = @transform_0, window_bounds = array<i64: 256, 128>}, {pipeline_mode = #tpu.pipeline_mode<synchronous>, transform_indices = @transform_1, window_bounds = array<i64: 128, 32>}, {pipeline_mode = #tpu.pipeline_mode<synchronous>, transform_indices = @transform_2, window_bounds = array<i64: 3, 3>}, {pipeline_mode = #tpu.pipeline_mode<synchronous>, transform_indices = @transform_3, window_bounds = array<i64: 32, 32>}, {pipeline_mode = #tpu.pipeline_mode<synchronous>, transform_indices = @transform_4, window_bounds = array<i64: 16, 32>}, {transform_indices = @transform_5, window_bounds = array<i64: 256, 16>}]} {
    %c0 = arith.constant 0 : index
    %c0_0 = arith.constant 0 : index
    %0 = vector.load %arg1[%c0, %c0_0] : memref<256x128xf32, #tpu.memory_space<vmem>>, vector<256x128xf32>
    %c0_1 = arith.constant 0 : index
    %c0_2 = arith.constant 0 : index
    %1 = vector.load %arg2[%c0_1, %c0_2] : memref<128x32xf32, #tpu.memory_space<vmem>>, vector<128x32xf32>
    %cst = arith.constant dense<0.000000e+00> : vector<256x32xf32>
    %2 = tpu.matmul %0, %1, %cst {dimension_numbers = #tpu.dot_dimension_numbers<[1], [0], [0], [1], [0, 0, 1, 1], [], []>} : vector<256x128xf32>, vector<128x32xf32>, vector<256x32xf32> -> vector<256x32xf32>
    %c0_3 = arith.constant 0 : index
    %c0_4 = arith.constant 0 : index
    %3 = vector.load %arg3[%c0_3, %c0_4] : memref<3x3xf32, #tpu.memory_space<vmem>>, vector<3x3xf32>
    %cst_5 = arith.constant 0.000000e+00 : f32
    %4 = vector.broadcast %cst_5 : f32 to vector<256x32xf32>
    %5 = vector.extract_strided_slice %3 {offsets = [0, 0], sizes = [1, 1], strides = [1, 1]} : vector<3x3xf32> to vector<1x1xf32>
    %6 = vector.extract_strided_slice %3 {offsets = [1, 0], sizes = [1, 1], strides = [1, 1]} : vector<3x3xf32> to vector<1x1xf32>
    %7 = vector.extract_strided_slice %3 {offsets = [2, 0], sizes = [1, 1], strides = [1, 1]} : vector<3x3xf32> to vector<1x1xf32>
    %8 = vector.broadcast %6 : vector<1x1xf32> to vector<256x32xf32>
    %9 = arith.subf %2, %8 : vector<256x32xf32>
    %10 = vector.broadcast %7 : vector<1x1xf32> to vector<256x32xf32>
    %11 = arith.mulf %10, %9 : vector<256x32xf32>
    %12 = math.tanh %11 : vector<256x32xf32>
    %13 = vector.broadcast %5 : vector<1x1xf32> to vector<256x32xf32>
    %14 = arith.mulf %13, %12 : vector<256x32xf32>
    %15 = arith.addf %4, %14 : vector<256x32xf32>
    %16 = vector.extract_strided_slice %3 {offsets = [0, 1], sizes = [1, 1], strides = [1, 1]} : vector<3x3xf32> to vector<1x1xf32>
    %17 = vector.extract_strided_slice %3 {offsets = [1, 1], sizes = [1, 1], strides = [1, 1]} : vector<3x3xf32> to vector<1x1xf32>
    %18 = vector.extract_strided_slice %3 {offsets = [2, 1], sizes = [1, 1], strides = [1, 1]} : vector<3x3xf32> to vector<1x1xf32>
    %19 = vector.broadcast %17 : vector<1x1xf32> to vector<256x32xf32>
    %20 = arith.subf %2, %19 : vector<256x32xf32>
    %21 = vector.broadcast %18 : vector<1x1xf32> to vector<256x32xf32>
    %22 = arith.mulf %21, %20 : vector<256x32xf32>
    %23 = math.tanh %22 : vector<256x32xf32>
    %24 = vector.broadcast %16 : vector<1x1xf32> to vector<256x32xf32>
    %25 = arith.mulf %24, %23 : vector<256x32xf32>
    %26 = arith.addf %15, %25 : vector<256x32xf32>
    %27 = vector.extract_strided_slice %3 {offsets = [0, 2], sizes = [1, 1], strides = [1, 1]} : vector<3x3xf32> to vector<1x1xf32>
    %28 = vector.extract_strided_slice %3 {offsets = [1, 2], sizes = [1, 1], strides = [1, 1]} : vector<3x3xf32> to vector<1x1xf32>
    %29 = vector.extract_strided_slice %3 {offsets = [2, 2], sizes = [1, 1], strides = [1, 1]} : vector<3x3xf32> to vector<1x1xf32>
    %30 = vector.broadcast %28 : vector<1x1xf32> to vector<256x32xf32>
    %31 = arith.subf %2, %30 : vector<256x32xf32>
    %32 = vector.broadcast %29 : vector<1x1xf32> to vector<256x32xf32>
    %33 = arith.mulf %32, %31 : vector<256x32xf32>
    %34 = math.tanh %33 : vector<256x32xf32>
    %35 = vector.broadcast %27 : vector<1x1xf32> to vector<256x32xf32>
    %36 = arith.mulf %35, %34 : vector<256x32xf32>
    %37 = arith.addf %26, %36 : vector<256x32xf32>
    %c0_6 = arith.constant 0 : index
    %c0_7 = arith.constant 0 : index
    %38 = vector.load %arg4[%c0_6, %c0_7] : memref<32x32xf32, #tpu.memory_space<vmem>>, vector<32x32xf32>
    %cst_8 = arith.constant dense<0.000000e+00> : vector<256x32xf32>
    %39 = tpu.matmul %37, %38, %cst_8 {dimension_numbers = #tpu.dot_dimension_numbers<[1], [1], [0], [0], [0, 0, 1, 0], [], []>} : vector<256x32xf32>, vector<32x32xf32>, vector<256x32xf32> -> vector<256x32xf32>
    %cst_9 = arith.constant 0.000000e+00 : f32
    %40 = vector.broadcast %cst_9 : f32 to vector<256x32xf32>
    %41 = arith.maximumf %39, %40 : vector<256x32xf32>
    %c0_10 = arith.constant 0 : index
    %c0_11 = arith.constant 0 : index
    %42 = vector.load %arg5[%c0_10, %c0_11] : memref<16x32xf32, #tpu.memory_space<vmem>>, vector<16x32xf32>
    %cst_12 = arith.constant dense<0.000000e+00> : vector<256x16xf32>
    %43 = tpu.matmul %41, %42, %cst_12 {dimension_numbers = #tpu.dot_dimension_numbers<[1], [1], [0], [0], [0, 0, 1, 0], [], []>} : vector<256x32xf32>, vector<16x32xf32>, vector<256x16xf32> -> vector<256x16xf32>
    %c0_13 = arith.constant 0 : index
    %c0_14 = arith.constant 0 : index
    %44 = vector.load %arg6[%c0_13, %c0_14] : memref<256x16xf32, #tpu.memory_space<vmem>>, vector<256x16xf32>
    tpu.vector_store %arg6[%c0_13, %c0_14], %43 {strides = array<i32>} : memref<256x16xf32, #tpu.memory_space<vmem>>, vector<256x16xf32>,
    return
  }
  func.func @transform_0(%arg0: i32) -> (i32, i32) {
    %c0_i32 = arith.constant 0 : i32
    %c0_i32_0 = arith.constant 0 : i32
    return %arg0, %c0_i32 : i32, i32
  }
  func.func @transform_1(%arg0: i32) -> (i32, i32) {
    %c0_i32 = arith.constant 0 : i32
    %c0_i32_0 = arith.constant 0 : i32
    %c0_i32_1 = arith.constant 0 : i32
    return %c0_i32, %c0_i32_0 : i32, i32
  }
  func.func @transform_2(%arg0: i32) -> (i32, i32) {
    %c0_i32 = arith.constant 0 : i32
    %c0_i32_0 = arith.constant 0 : i32
    %c0_i32_1 = arith.constant 0 : i32
    return %c0_i32, %c0_i32_0 : i32, i32
  }
  func.func @transform_3(%arg0: i32) -> (i32, i32) {
    %c0_i32 = arith.constant 0 : i32
    %c0_i32_0 = arith.constant 0 : i32
    %c0_i32_1 = arith.constant 0 : i32
    return %c0_i32, %c0_i32_0 : i32, i32
  }
  func.func @transform_4(%arg0: i32) -> (i32, i32) {
    %c0_i32 = arith.constant 0 : i32
    %c0_i32_0 = arith.constant 0 : i32
    %c0_i32_1 = arith.constant 0 : i32
    return %c0_i32, %c0_i32_0 : i32, i32
  }
  func.func @transform_5(%arg0: i32) -> (i32, i32) {
    %c0_i32 = arith.constant 0 : i32
    %c0_i32_0 = arith.constant 0 : i32
    return %arg0, %c0_i32 : i32, i32
  }
}

</mosaic_0001>

<bundles_post_ra>
// kernel: tpu_custom_call.1
= control target key start
LH: loop header
LB: loop body
LE: loop exit
PB: predicated region body
PF: predicated region fallthrough
CT: control target
= control target key end

     0   :  { %10 = vsyncpa [#allocation3], 0  ;;  %s2668_s0 = inlined_call_operand.hbm [shape: f32[512,128], index: 0, kind: input, shape index: {}]   ;;  %s2669_s1 = inlined_call_operand.vmem [shape: f32[128,32], index: 1, kind: input, shape index: {}]   ;;  %s2670_s2 = inlined_call_operand.vmem [shape: f32[3,3], index: 2, kind: input, shape index: {}]   ;;  %s2671_s3 = inlined_call_operand.vmem [shape: f32[32,32], index: 3, kind: input, shape index: {}]   ;;  %s2672_s4 = inlined_call_operand.vmem [shape: f32[16,32], index: 4, kind: input, shape index: {}]   ;;  %s2673_s5 = inlined_call_operand.vmem [shape: f32[512,16], index: 5, kind: output, shape index: {}]  }
   0x1   :  { %12 = vsyncpa [#allocation3 + $0x1], 0  ;;  %s1967_s18 = smov 0   ;;  %s1969_s19 = smov 0  }
   0x2   :  { %s1971_s20 = smov 0   ;;  %s1973_s21 = smov 0  }
   0x3 LB: > { %s1508_s22 = sadd.s32 4294967295, %s1931_s21   ;;  %s1987_s23 = sadd.s32 1, %s1931_s21   ;;  %s1931_s21 = sphi %s1973_s21, %s2680_s21   ;;  %s1927_s20 = sphi %s1971_s20, %s2679_s20   ;;  %s1923_s19 = sphi %s1969_s19, %s2678_s19   ;;  %s1919_s18 = sphi %s1967_s18, %s2677_s18  }
   0x4   : > { %s22_s24 = ssub.s32 %s1931_s21, %s1987_s23  ;;  %s25_s25 = sadd.s32 1, %s1927_s20 }
   0x5   : > { %p23_p0 = scmp.eq.s32.totalorder %s22_s24, 0  ;;  %p32_p1 = scmp.ne.s32.totalorder %s1927_s20, %s1923_s19 }
   0x6   : > { %p33_p2 = scmp.eq.s32.totalorder %s1931_s21, 0  ;;  %p38_p3 = scmp.ne.s32.totalorder %s1923_s19, %s1919_s18 }
   0x7   : > { %s1997_s26 = scalar_select %p23_p0, %s1927_s20, %s25_s25  }
   0x8   : > { %p1999_p4 = por %p33_p2, %p32_p1  ;;  %p39_p5 = scmp.eq.s32.totalorder %s1508_s22, 0 }
   0x9   : > { %p1638_p6 = scmp.lt.s32.totalorder %s1931_s21, 2  ;;  %s184_s29 = sand.u32 1, %s1927_s20  }
   0xa   : > { %p2006_p7 = por %p39_p5, %p38_p3  ;;  %s1512_s30 = sshll.u32 %s184_s29, 8 }
   0xb   : > { %s1591_s6 = sshll.u32 %s1931_s21, 8  ;;  %s188_s10 = scalar_lea.vmem [#allocation2], %s1512_s30 }
   0xc   : > { %s193_s9 = scalar_lea.hbm %s2668_s0, %s1591_s6  ;;  %s196_s11 = sshll.u32 %s188_s10, 4  ;;  %s197_s11 = int_to_ptr.vmem [resolvable:$true] %s196_s11 }
   0xd   : > { %s194_s12 = sshll.u32 %s193_s9, 4  ;;  %p2017_p8 = pnand %p1638_p6, %p1999_p4  ;;  %s195_s12 = int_to_ptr.hbm [resolvable:$true] %s194_s12 }
   0xe   : > { %p1515_p9 = scmp.ge.s32.totalorder %s1931_s21, 1  ;;  %s185_s14 = scalar_lea.sflag [#allocation3], %s184_s29 }
   0xf   : > { %s1867_s15 = sshra.s32 %s195_s12, 4  ;;  %p1871_p11 = pneg %p2017_p8  ;;  %s1868_s15 = int_to_ptr.hbm [resolvable:$true] %s1867_s15 }
  0x10   : > { %s1869_s16 = scalar_lea.hbm %s1868_s15, 256  ;;  %s1874_s24 = scalar_lea.hbm %s2668_s0, 512 }
  0x11   : > { %p1870_p10 = scmp.ne.s32.totalorder %s1868_s15, %s1869_s16  ;;  %p1875_p0 = scmp.lt.s32.totalorder %s1868_s15, %s2668_s0 }
  0x12   : > { %p1876_p1 = scmp.lt.s32.totalorder %s1874_s24, %s1869_s16 }
  0x13   : > { %p1872_p12 = pnand %p1871_p11, %p1870_p10 }
  0x14   : > { %p1877_p2 = por %p1876_p1, %p1875_p0 }
  0x15   : > { %p1873_p13 = pneg %p1872_p12 }
  0x17   : > { %p1878_p3 = pnand %p1877_p2, %p1873_p13 }
  0x19   : > { %1881 = shalt.err (!%p1878_p3)
}
  0x1a   : > { %s1933_s29 = smov 128   ;;  %s1934_s30 = smov 8  }
  0x1b   : > { %1637 = dma.hbm_to_vmem [thread:$0]  (!%p2017_p8), %s195_s12, 4096, %s197_s11, %s185_s14, %s1933_s29, %s1933_s29, %s1934_s30  }
  0x1c   : > { %p204_p4 = scmp.lt.s32.totalorder %s1931_s21, 3 }
  0x1e   : > { %p205_p5 = pnand %p1515_p9, %p204_p4 }
  0x1f   : > { %s210_s6 = sand.u32 (!%p205_p5), 1, %s1923_s19  }
  0x20   : > { %208 = sbr.rel (%p205_p5) target bundleno = 694 (0x2b6), region = 40  ;;  %s1516_s7 = sshll.u32 (!%p205_p5), %s210_s6, 8 }
  0x21   : > { %s211_s8 = scalar_lea.sflag (!%p205_p5), [#allocation3], %s210_s6  ;;  %s2036_s9 = scalar_lea.vmem (!%p205_p5), [#allocation2], %s1516_s7 }
  0x25   : > { %1914 = dma.done.wait (%p2006_p7), %s211_s8, 4096  }
  0x26   : > { %1916 = vsyncadd (%p2006_p7), %s211_s8, 4294963200  ;;  %v296_v0 = vld [vmem:[%s2669_s1 + $0x78] sm:$0xff]  ;;  %v410_v1 = vld [vmem:[%s2670_s2] sm:$0x7]  ;;  %s1935_s16 = smov 127   ;;  %s1936_s25 = smov 126  }
  0x27   : > { %v295_v2 = vld [vmem:[%s2669_s1 + $0x70] sm:$0xff]  ;;  %297 = vmatpush.msra.mxu0 %v296_v0  ;;  %1592 = vmatpush.msra.mxu3 %v296_v0  ;;  %v412_v3 = vrot.slane %v410_v1, 1  ;;  %v294_v4 = vld [vmem:[%s2669_s1 + $0x68] sm:$0xff]  ;;  %v448_v5 = vrot.slane %v410_v1, 2  ;;  %v293_v6 = vld [vmem:[%s2669_s1 + $0x60] sm:$0xff]  ;;  %vm937_vm0 = vcmask 261120  }
  0x28   : > { %689 = vrot.lane.b32.xlu1 %v410_v1, %s1935_s16  ;;  %v292_v7 = vld [vmem:[%s2669_s1 + $0x58] sm:$0xff]  ;;  %v291_v8 = vld [vmem:[%s2669_s1 + $0x50] sm:$0xff]  ;;  %v290_v9 = vld [vmem:[%s2669_s1 + $0x48] sm:$0xff]  ;;  %s1517_s11 = sshll.u32 %s1508_s22, 5  ;;  %vm1408_vm1 = vcmask 130048  }
  0x29   : > { %583 = vrot.lane.b32.xlu0 %v412_v3, %s1935_s16  ;;  %298 = vmatpush.msra.mxu0 %v295_v2  ;;  %1614 = vpush %v412_v3  ;;  %v289_v10 = vld [vmem:[%s2669_s1 + $0x40] sm:$0xff]  ;;  %v288_v11 = vld [vmem:[%s2669_s1 + $0x38] sm:$0xff]  ;;  %v287_v12 = vld [vmem:[%s2669_s1 + $0x30] sm:$0xff]  ;;  %p244_p6 = scmp.lt.s32.totalorder %s1517_s11, 63 }
  0x2a   : > { %1593 = vmatpush.msra.mxu3 %v295_v2  ;;  %795 = vrot.lane.b32.xlu2 %v448_v5, %s1936_s25  ;;  %1616 = vpush %v448_v5  ;;  %v286_v13 = vld [vmem:[%s2669_s1 + $0x28] sm:$0xff]  ;;  %v285_v14 = vld [vmem:[%s2669_s1 + $0x20] sm:$0xff]  ;;  %v284_v15 = vld [vmem:[%s2669_s1 + $0x18] sm:$0xff] }
  0x2b   : > { %299 = vmatpush.msra.mxu0 %v294_v4  ;;  %1618 = vpush %v410_v1  ;;  %v283_v16 = vld [vmem:[%s2669_s1 + $0x10] sm:$0xff]  ;;  %v282_v17 = vld [vmem:[%s2669_s1 + $0x8] sm:$0xff]  ;;  %v281_v18 = vld [vmem:[%s2669_s1] sm:$0xff]  ;;  %s2682_s11 = smov (!%p244_p6, %s1517_s11), 63 }
  0x2c   : > { %1594 = vmatpush.msra.mxu3 %v294_v4  ;;  %v249_v19 = vld [vmem:[%s2036_s9] sm:$0xff]  ;;  %v272_v20 = vld [vmem:[%s2036_s9 + $0xb8] sm:$0xff]  ;;  %v250_v21 = vld [vmem:[%s2036_s9 + $0x8] sm:$0xff]  ;;  %s1518_s12 = sshll.u32 %s2682_s11, 3 }
  0x2d   : > { %300 = vmatpush.msra.mxu0 %v293_v6  ;;  %v273_v22 = vld [vmem:[%s2036_s9 + $0xc0] sm:$0xff]  ;;  %v251_v23 = vld [vmem:[%s2036_s9 + $0x10] sm:$0xff]  ;;  %v274_v24 = vld [vmem:[%s2036_s9 + $0xc8] sm:$0xff] }
  0x2e   : > { %1595 = vmatpush.msra.mxu3 %v293_v6  ;;  %v252_v25 = vld [vmem:[%s2036_s9 + $0x18] sm:$0xff]  ;;  %v275_v26 = vld [vmem:[%s2036_s9 + $0xd0] sm:$0xff]  ;;  %v253_v27 = vld [vmem:[%s2036_s9 + $0x20] sm:$0xff] }
  0x2f   : > { %301 = vmatpush.msra.mxu0 %v292_v7  ;;  %v276_v28 = vld [vmem:[%s2036_s9 + $0xd8] sm:$0xff]  ;;  %v254_v29 = vld [vmem:[%s2036_s9 + $0x28] sm:$0xff]  ;;  %v277_v30 = vld [vmem:[%s2036_s9 + $0xe0] sm:$0xff] }
  0x30   : > { %1596 = vmatpush.msra.mxu3 %v292_v7  ;;  %758 = vrot.lane.b32.xlu1 %v412_v3, %s1936_s25  ;;  %v255_v31 = vld [vmem:[%s2036_s9 + $0x30] sm:$0xff]  ;;  %v278_v32 = vld [vmem:[%s2036_s9 + $0xe8] sm:$0xff]  ;;  %v256_v33 = vld [vmem:[%s2036_s9 + $0x38] sm:$0xff] }
  0x31   : > { %620 = vrot.lane.b32.xlu0 %v448_v5, %s1935_s16  ;;  %302 = vmatpush.msra.mxu0 %v291_v8  ;;  %v279_v34 = vld [vmem:[%s2036_s9 + $0xf0] sm:$0xff]  ;;  %v257_v35 = vld [vmem:[%s2036_s9 + $0x40] sm:$0xff]  ;;  %v280_v36 = vld [vmem:[%s2036_s9 + $0xf8] sm:$0xff]  ;;  %s2579_s16 = scalar_lea.vmem %s2673_s5, %s1518_s12 }
  0x32   : > { %1597 = vmatpush.msra.mxu3 %v291_v8  ;;  %864 = vrot.lane.b32.xlu2 %v410_v1, %s1936_s25  ;;  %v258_v37 = vld [vmem:[%s2036_s9 + $0x48] sm:$0xff]  ;;  %v259_v38 = vld [vmem:[%s2036_s9 + $0x50] sm:$0xff]  ;;  %v260_v41 = vld [vmem:[%s2036_s9 + $0x58] sm:$0xff] }
  0x33   : > { %303 = vmatpush.msra.mxu0 %v290_v9  ;;  %v261_v45 = vld [vmem:[%s2036_s9 + $0x60] sm:$0xff]  ;;  %v262_v47 = vld [vmem:[%s2036_s9 + $0x68] sm:$0xff]  ;;  %v263_v48 = vld [vmem:[%s2036_s9 + $0x70] sm:$0xff] }
  0x34   : > { %1598 = vmatpush.msra.mxu3 %v290_v9  ;;  %v936_v49 = vld [vmem:[%s2671_s3 + $0x18] sm:$0xff]  ;;  %v935_v51 = vld [vmem:[%s2671_s3 + $0x10] sm:$0xff]  ;;  %v265_v53 = vld [vmem:[%s2036_s9 + $0x80] sm:$0xff] }
  0x35   : > { %304 = vmatpush.msra.mxu0 %v289_v10  ;;  %v264_v50 = vld [vmem:[%s2036_s9 + $0x78] sm:$0xff]  ;;  %1519 = vmatpush.xpose.msk.msra.mxu1 %vm937_vm0, %v936_v49  ;;  %v934_v54 = vld [vmem:[%s2671_s3 + $0x8] sm:$0xff]  ;;  %v933_v56 = vld [vmem:[%s2671_s3] sm:$0xff] }
  0x36   : > { %1599 = vmatpush.msra.mxu3 %v289_v10  ;;  %v266_v58 = vld [vmem:[%s2036_s9 + $0x88] sm:$0xff]  ;;  %v267_v63 = vld [vmem:[%s2036_s9 + $0x90] sm:$0xff] }
  0x37   : > { %305 = vmatpush.msra.mxu0 %v288_v11 }
  0x38   : > { %1600 = vmatpush.msra.mxu3 %v288_v11 }
  0x39   : > { %306 = vmatpush.msra.mxu0 %v287_v12  ;;  %1520 = vmatpush.xpose.msk.msra.mxu1 %vm937_vm0, %v935_v51 }
  0x3a   : > { %1601 = vmatpush.msra.mxu3 %v287_v12 }
  0x3b   : > { %307 = vmatpush.msra.mxu0 %v286_v13 }
  0x3c   : > { %1602 = vmatpush.msra.mxu3 %v286_v13 }
  0x3d   : > { %308 = vmatpush.msra.mxu0 %v285_v14  ;;  %1521 = vmatpush.xpose.msk.msra.mxu1 %vm937_vm0, %v934_v54 }
  0x3e   : > { %1603 = vmatpush.msra.mxu3 %v285_v14 }
  0x3f   : > { %309 = vmatpush.msra.mxu0 %v284_v15 }
  0x40   : > { %1604 = vmatpush.msra.mxu3 %v284_v15 }
  0x41   : > { %310 = vmatpush.msra.mxu0 %v283_v16  ;;  %1522 = vmatpush.xpose.msk.msra.mxu1 %vm937_vm0, %v933_v56 }
  0x42   : > { %1605 = vmatpush.msra.mxu3 %v283_v16  ;;  %v268_v16 = vld [vmem:[%s2036_s9 + $0x98] sm:$0xff] }
  0x43   : > { %311 = vmatpush.msra.mxu0 %v282_v17 }
  0x44   : > { %1606 = vmatpush.msra.mxu3 %v282_v17 }
  0x45   : > { %312 = vmatpush.msra.mxu0 %v281_v18 }
  0x46   : > { %1607 = vmatpush.msra.mxu3 %v281_v18  ;;  %313 = vmatmul.f32.vlgmr.msra.gmra.mxu0 %v249_v19 }
  0x47   : > { %382 = vmatmul.f32.vlgmr.msra.gmra.mxu3 %v272_v20 }
  0x48   : > { %1608 = vmatpush.xpose.msk.msrb.mxu3 %vm937_vm0, %v936_v49 }
  0x4c   : > { %1609 = vmatpush.xpose.msk.msrb.mxu3 %vm937_vm0, %v935_v51 }
  0x4e   : > { %316 = vmatmul.f32.gmra.mxu0 %v250_v21 }
  0x4f   : > { %385 = vmatmul.f32.gmra.mxu3 %v273_v22 }
  0x50   : > { %1610 = vmatpush.xpose.msk.msrb.mxu3 %vm937_vm0, %v934_v54 }
  0x54   : > { %1611 = vmatpush.xpose.msk.msrb.mxu3 %vm937_vm0, %v933_v56 }
  0x56   : > { %319 = vmatmul.f32.gmra.mxu0 %v251_v23 }
  0x57   : > { %388 = vmatmul.f32.gmra.mxu3 %v274_v24 }
  0x5a   : > { %s1615_s28 = spop %1614 }
  0x5b   : > { %s1617_s18 = spop %1616  ;;  %v2144_v59 = vstv %s1615_s28 }
  0x5c   : > { %s2142_s24 = spop %1618  ;;  %v2152_v1 = vstv %s1617_s18 }
  0x5e   : > { %322 = vmatmul.f32.gmra.mxu0 %v252_v25 }
  0x5f   : > { %391 = vmatmul.f32.gmra.mxu3 %v275_v26 }
  0x66   : > { %325 = vmatmul.f32.gmra.mxu0 %v253_v27 }
  0x67   : > { %394 = vmatmul.f32.gmra.mxu3 %v276_v28  ;;  %v2185_v28 = vstv %s2142_s24 }
  0x6e   : > { %328 = vmatmul.f32.gmra.mxu0 %v254_v29 }
  0x6f   : > { %397 = vmatmul.f32.gmra.mxu3 %v277_v30 }
  0x76   : > { %331 = vmatmul.f32.gmra.mxu0 %v255_v31 }
  0x77   : > { %400 = vmatmul.f32.gmra.mxu3 %v278_v32 }
  0x7e   : > { %334 = vmatmul.f32.gmra.mxu0 %v256_v33 }
  0x7f   : > { %403 = vmatmul.f32.gmra.mxu3 %v279_v34 }
  0x84   : > { %v796_v42 = vpop.permute.xlu2 %795 }
  0x86   : > { %337 = vmatmul.f32.gmra.mxu0 %v257_v35 }
  0x87   : > { %406 = vmatmul.f32.gmra.mxu3 %v280_v36 }
  0x8c   : > { %v865_v46 = vpop.permute.xlu2 %864 }
  0x8e   : > { %340 = vmatmul.f32.gmra.mxu0 %v258_v37 }
  0x96   : > { %343 = vmatmul.f32.gmra.mxu0 %v259_v38  ;;  %v269_v38 = vld [vmem:[%s2036_s9 + $0xa0] sm:$0xff] }
  0x9a   : > { %v690_v39 = vpop.permute.xlu1 %689 }
  0x9b   : > { %v584_v40 = vpop.permute.xlu0 %583 }
  0x9c   : > { %1620 = vpush %v584_v40 }
  0x9e   : > { %346 = vmatmul.f32.gmra.mxu0 %v260_v41 }
  0xa2   : > { %v759_v43 = vpop.permute.xlu1 %758 }
  0xa3   : > { %v621_v44 = vpop.permute.xlu0 %620 }
  0xa4   : > { %1622 = vpush %v621_v44 }
  0xa5   : > { %1624 = vpush %v690_v39 }
  0xa6   : > { %1626 = vpush %v759_v43  ;;  %349 = vmatmul.f32.gmra.mxu0 %v261_v45 }
  0xa7   : > { %1628 = vpush %v796_v42 }
  0xa8   : > { %1630 = vpush %v865_v46 }
  0xae   : > { %352 = vmatmul.f32.gmra.mxu0 %v262_v47 }
  0xb6   : > { %355 = vmatmul.f32.gmra.mxu0 %v263_v48 }
  0xbe   : > { %358 = vmatmul.f32.gmra.mxu0 %v264_v50 }
  0xc3   : > { %v314_v52 = vpop.f32.mrf.mxu0 }
  0xc4   : > { %v416_v0 = vsub.f32 %v314_v52, %v2144_v59 }
  0xc6   : > { %361 = vmatmul.f32.gmra.mxu0 %v265_v53  ;;  %v452_v5 = vmul.f32 %v2152_v1, %v416_v0 }
  0xca   : > { %v2134_v55 = vpop.f32.mrf.mxu3 }
  0xcb   : > { %v317_v57 = vpop.f32.mrf.mxu0 }
  0xcc   : > { %v417_v6 = vsub.f32 %v317_v57, %v2144_v59 }
  0xcd   : > { %s1621_s25 = spop %1620 }
  0xce   : > { %364 = vmatmul.f32.gmra.mxu0 %v266_v58  ;;  %v2146_v60 = vstv %s1621_s25  ;;  %v453_v19 = vmul.f32 %v2152_v1, %v417_v6 }
  0xcf   : > { %v588_v2 = vsub.f32 %v314_v52, %v2146_v60  ;;  %v589_v7 = vsub.f32 %v317_v57, %v2146_v60 }
  0xd2   : > { %v2148_v61 = vpop.f32.mrf.mxu3 }
  0xd3   : > { %v320_v62 = vpop.f32.mrf.mxu0 }
  0xd4   : > { %v418_v10 = vsub.f32 %v320_v62, %v2144_v59  ;;  %v590_v20 = vsub.f32 %v320_v62, %v2146_v60 }
  0xd5   : > { %s1623_s27 = spop %1622 }
  0xd6   : > { %v2155_v3 = vstv %s1623_s27  ;;  %s2157_s29 = spop %1624  ;;  %367 = vmatmul.f32.gmra.mxu0 %v267_v63  ;;  %v454_v21 = vmul.f32 %v2152_v1, %v418_v10 }
  0xd7   : > { %v625_v4 = vmul.f32 %v2155_v3, %v588_v2  ;;  %s1627_s30 = spop %1626  ;;  %v626_v13 = vmul.f32 %v2155_v3, %v589_v7  ;;  %v627_v29 = vmul.f32 %v2155_v3, %v590_v20  ;;  %v2189_v31 = vstv %s2157_s29 }
  0xd8   : > { %s1629_s6 = spop %1628  ;;  %v2163_v8 = vstv %s1627_s30 }
  0xd9   : > { %v2165_v9 = vstv %s1629_s6  ;;  %1675 = vtanh.f32 %v625_v4  ;;  %v763_v11 = vsub.f32 %v314_v52, %v2163_v8  ;;  %v764_v14 = vsub.f32 %v317_v57, %v2163_v8  ;;  %s1631_s7 = spop %1630 }
  0xda   : > { %v389_v12 = vpop.f32.mrf.mxu3  ;;  %1677 = vtanh.f32 %v452_v5  ;;  %v765_v22 = vsub.f32 %v320_v62, %v2163_v8  ;;  %v2202_v43 = vstv %s1631_s7 }
  0xdb   : > { %v2171_v15 = vpop.f32.mrf.mxu0  ;;  %v800_v17 = vmul.f32 %v2165_v9, %v763_v11  ;;  %v441_v18 = vsub.f32 %v389_v12, %v2144_v59  ;;  %v613_v23 = vsub.f32 %v389_v12, %v2146_v60  ;;  %v801_v24 = vmul.f32 %v2165_v9, %v764_v14  ;;  %v270_v14 = vld [vmem:[%s2036_s9 + $0xa8] sm:$0xff] }
  0xdc   : > { %v788_v27 = vsub.f32 %v389_v12, %v2163_v8  ;;  %v802_v32 = vmul.f32 %v2165_v9, %v765_v22  ;;  %v419_v42 = vsub.f32 %v2171_v15, %v2144_v59  ;;  %v591_v45 = vsub.f32 %v2171_v15, %v2146_v60 }
  0xdd   : > { %1679 = vtanh.f32 %v800_v17  ;;  %v477_v26 = vmul.f32 %v2152_v1, %v441_v18  ;;  %v650_v33 = vmul.f32 %v2155_v3, %v613_v23  ;;  %v766_v51 = vsub.f32 %v2171_v15, %v2163_v8 }
  0xde   : > { %370 = vmatmul.f32.gmra.mxu0 %v268_v16  ;;  %1681 = vtanh.f32 %v626_v13  ;;  %v825_v41 = vmul.f32 %v2165_v9, %v788_v27  ;;  %v455_v56 = vmul.f32 %v2152_v1, %v419_v42  ;;  %v628_v62 = vmul.f32 %v2155_v3, %v591_v45 }
  0xdf   : > { %v1676_v25 = vpop.eup %1675  ;;  %1683 = vtanh.f32 %v453_v19  ;;  %v803_v7 = vmul.f32 %v2165_v9, %v766_v51  ;;  %v271_v51 = vld [vmem:[%s2036_s9 + $0xb0] sm:$0xff] }
  0xe0   : > { %v1678_v30 = vpop.eup %1677  ;;  %1685 = vtanh.f32 %v454_v21  ;;  %v694_v39 = vmul.f32 %v1676_v25, %v2189_v31 }
  0xe1   : > { %1687 = vtanh.f32 %v801_v24  ;;  %v519_v47 = vmul.f32 %v1678_v30, %v2185_v28 }
  0xe2   : > { %v392_v34 = vpop.f32.mrf.mxu3  ;;  %1689 = vtanh.f32 %v477_v26 }
  0xe3   : > { %v442_v35 = vsub.f32 %v392_v34, %v2144_v59  ;;  %v614_v36 = vsub.f32 %v392_v34, %v2146_v60  ;;  %v2195_v37 = vpop.f32.mrf.mxu0  ;;  %v1680_v40 = vpop.eup %1679  ;;  %1691 = vtanh.f32 %v627_v29  ;;  %v789_v49 = vsub.f32 %v392_v34, %v2163_v8 }
  0xe4   : > { %v1682_v44 = vpop.eup %1681  ;;  %1693 = vtanh.f32 %v650_v33  ;;  %v726_v52 = vadd.f32 %v694_v39, %v519_v47  ;;  %v869_v53 = vmul.f32 %v1680_v40, %v2202_v43  ;;  %v420_v10 = vsub.f32 %v2195_v37, %v2144_v59 }
  0xe5   : > { %v478_v46 = vmul.f32 %v2152_v1, %v442_v35  ;;  %v651_v48 = vmul.f32 %v2155_v3, %v614_v36  ;;  %v1684_v50 = vpop.eup %1683  ;;  %1695 = vtanh.f32 %v802_v32  ;;  %v695_v57 = vmul.f32 %v1682_v44, %v2189_v31 }
  0xe6   : > { %373 = vmatmul.f32.gmra.mxu0 %v269_v38  ;;  %v1686_v54 = vpop.eup %1685  ;;  %1697 = vtanh.f32 %v825_v41  ;;  %v901_v63 = vadd.f32 %v869_v53, %v726_v52  ;;  %v826_v2 = vmul.f32 %v2165_v9, %v789_v49  ;;  %v520_v5 = vmul.f32 %v1684_v50, %v2185_v28 }
  0xe7   : > { %v1688_v58 = vpop.eup %1687  ;;  %1699 = vtanh.f32 %v478_v46  ;;  %v592_v16 = vsub.f32 %v2195_v37, %v2146_v60  ;;  %v521_v25 = vmul.f32 %v1686_v54, %v2185_v28  ;;  %v456_v32 = vmul.f32 %v2152_v1, %v420_v10 }
  0xe8   : > { %v1690_v0 = vpop.eup %1689  ;;  %1701 = vtanh.f32 %v651_v48  ;;  %1523 = vmatmul.msk.f32.vlgmr.msra.gmra.mxu1 %vm937_vm0, %v901_v63  ;;  %v727_v17 = vadd.f32 %v695_v57, %v520_v5  ;;  %v870_v18 = vmul.f32 %v1688_v58, %v2202_v43  ;;  %v767_v41 = vsub.f32 %v2195_v37, %v2163_v8 }
  0xe9   : > { %v1692_v6 = vpop.eup %1691  ;;  %1703 = vtanh.f32 %v455_v56  ;;  %v544_v22 = vmul.f32 %v1690_v0, %v2185_v28  ;;  %v629_v33 = vmul.f32 %v2155_v3, %v592_v16 }
  0xea   : > { %v395_v4 = vpop.f32.mrf.mxu3  ;;  %v1694_v15 = vpop.eup %1693  ;;  %1705 = vtanh.f32 %v628_v62  ;;  %v696_v26 = vmul.f32 %v1692_v6, %v2189_v31  ;;  %v902_v34 = vadd.f32 %v870_v18, %v727_v17 }
  0xeb   : > { %v443_v11 = vsub.f32 %v395_v4, %v2144_v59  ;;  %v615_v12 = vsub.f32 %v395_v4, %v2146_v60  ;;  %v2224_v13 = vpop.f32.mrf.mxu0  ;;  %v1696_v19 = vpop.eup %1695  ;;  %1707 = vtanh.f32 %v826_v2  ;;  %v790_v24 = vsub.f32 %v395_v4, %v2163_v8 }
  0xec   : > { %v1698_v23 = vpop.eup %1697  ;;  %v719_v29 = vmul.f32 %v1694_v15, %v2189_v31  ;;  %v728_v45 = vadd.f32 %v696_v26, %v521_v25  ;;  %v871_v52 = vmul.f32 %v1696_v19, %v2202_v43  ;;  %v421_v37 = vsub.f32 %v2224_v13, %v2144_v59 }
  0xed   : > { %v479_v20 = vmul.f32 %v2152_v1, %v443_v11  ;;  %v652_v21 = vmul.f32 %v2155_v3, %v615_v12  ;;  %v1700_v27 = vpop.eup %1699  ;;  %v894_v36 = vmul.f32 %v1698_v23, %v2202_v43  ;;  %v827_v42 = vmul.f32 %v2165_v9, %v790_v24 }
  0xee   : > { %376 = vmatmul.f32.gmra.mxu0 %v270_v14  ;;  %v1702_v30 = vpop.eup %1701  ;;  %v751_v35 = vadd.f32 %v719_v29, %v544_v22  ;;  %v545_v38 = vmul.f32 %v1700_v27, %v2185_v28  ;;  %v593_v54 = vsub.f32 %v2224_v13, %v2146_v60  ;;  %v804_v2 = vmul.f32 %v2165_v9, %v767_v41 }
  0xef   : > { %1709 = vtanh.f32 %v479_v20  ;;  %v720_v39 = vmul.f32 %v1702_v30, %v2189_v31  ;;  %v1704_v40 = vpop.eup %1703  ;;  %v903_v5 = vadd.f32 %v871_v52, %v728_v45  ;;  %v768_v18 = vsub.f32 %v2224_v13, %v2163_v8 }
  0xf0   : > { %1711 = vtanh.f32 %v652_v21  ;;  %v1706_v46 = vpop.eup %1705  ;;  %v926_v47 = vadd.f32 %v894_v36, %v751_v35  ;;  %1524 = vmatmul.msk.f32.gmra.mxu1 %vm937_vm0, %v902_v34  ;;  %v522_v10 = vmul.f32 %v1704_v40, %v2185_v28  ;;  %v630_v12 = vmul.f32 %v2155_v3, %v593_v54 }
  0xf1   : > { %1713 = vtanh.f32 %v803_v7  ;;  %v1708_v53 = vpop.eup %1707  ;;  %v752_v62 = vadd.f32 %v720_v39, %v545_v38  ;;  %v457_v7 = vmul.f32 %v2152_v1, %v421_v37  ;;  %v697_v11 = vmul.f32 %v1706_v46, %v2189_v31 }
  0xf2   : > { %v398_v44 = vpop.f32.mrf.mxu3  ;;  %1715 = vtanh.f32 %v456_v32  ;;  %1548 = vmatmul.msk.f32.vlgmr.msrb.gmra.mxu3 %vm937_vm0, %v926_v47  ;;  %v895_v4 = vmul.f32 %v1708_v53, %v2202_v43  ;;  %v805_v35 = vmul.f32 %v2165_v9, %v768_v18 }
  0xf3   : > { %v444_v48 = vsub.f32 %v398_v44, %v2144_v59  ;;  %v616_v49 = vsub.f32 %v398_v44, %v2146_v60  ;;  %v2248_v50 = vpop.f32.mrf.mxu0  ;;  %1717 = vtanh.f32 %v629_v33  ;;  %v791_v0 = vsub.f32 %v398_v44, %v2163_v8 }
  0xf4   : > { %1719 = vtanh.f32 %v827_v42  ;;  %v927_v14 = vadd.f32 %v895_v4, %v752_v62  ;;  %v422_v22 = vsub.f32 %v2248_v50, %v2144_v59  ;;  %v594_v13 = vsub.f32 %v2248_v50, %v2146_v60 }
  0xf5   : > { %v1710_v56 = vpop.eup %1709  ;;  %v480_v57 = vmul.f32 %v2152_v1, %v444_v48  ;;  %v653_v58 = vmul.f32 %v2155_v3, %v616_v49  ;;  %v828_v19 = vmul.f32 %v2165_v9, %v791_v0  ;;  %v729_v27 = vadd.f32 %v697_v11, %v522_v10 }
  0xf6   : > { %v1712_v63 = vpop.eup %1711  ;;  %379 = vmatmul.f32.gmra.mxu0 %v271_v51  ;;  %v546_v15 = vmul.f32 %v1710_v56, %v2185_v28  ;;  %v458_v39 = vmul.f32 %v2152_v1, %v422_v22  ;;  %v631_v41 = vmul.f32 %v2155_v3, %v594_v13  ;;  %v769_v52 = vsub.f32 %v2248_v50, %v2163_v8 }
  0xf7   : > { %1721 = vtanh.f32 %v480_v57  ;;  %v1714_v6 = vpop.eup %1713  ;;  %v721_v16 = vmul.f32 %v1712_v63, %v2189_v31 }
  0xf8   : > { %1723 = vtanh.f32 %v653_v58  ;;  %v1716_v17 = vpop.eup %1715  ;;  %1525 = vmatmul.msk.f32.gmra.mxu1 %vm937_vm0, %v903_v5  ;;  %v872_v38 = vmul.f32 %v1714_v6, %v2202_v43  ;;  %v806_v10 = vmul.f32 %v2165_v9, %v769_v52 }
  0xf9   : > { %v1718_v21 = vpop.eup %1717  ;;  %1725 = vtanh.f32 %v804_v2  ;;  %v753_v33 = vadd.f32 %v721_v16, %v546_v15  ;;  %v523_v44 = vmul.f32 %v1716_v17, %v2185_v28 }
  0xfa   : > { %v401_v20 = vpop.f32.mrf.mxu3  ;;  %v1720_v26 = vpop.eup %1719  ;;  %1727 = vtanh.f32 %v457_v7  ;;  %1549 = vmatmul.msk.f32.gmra.mxu3 %vm937_vm0, %v927_v14  ;;  %v904_v42 = vadd.f32 %v872_v38, %v729_v27  ;;  %v698_v49 = vmul.f32 %v1718_v21, %v2189_v31 }
  0xfb   : > { %v445_v23 = vsub.f32 %v401_v20, %v2144_v59  ;;  %v617_v24 = vsub.f32 %v401_v20, %v2146_v60  ;;  %v2276_v25 = vpop.f32.mrf.mxu0  ;;  %1729 = vtanh.f32 %v630_v12  ;;  %v792_v36 = vsub.f32 %v401_v20, %v2163_v8 }
  0xfc   : > { %1731 = vtanh.f32 %v828_v19  ;;  %v896_v40 = vmul.f32 %v1720_v26, %v2202_v43  ;;  %v423_v63 = vsub.f32 %v2276_v25, %v2144_v59  ;;  %v595_v50 = vsub.f32 %v2276_v25, %v2146_v60 }
  0xfd   : > { %v1722_v29 = vpop.eup %1721  ;;  %v481_v30 = vmul.f32 %v2152_v1, %v445_v23  ;;  %v654_v32 = vmul.f32 %v2155_v3, %v617_v24  ;;  %v829_v53 = vmul.f32 %v2165_v9, %v792_v36  ;;  %v730_v6 = vadd.f32 %v698_v49, %v523_v44 }
  0xfe   : > { %v1724_v34 = vpop.eup %1723  ;;  %v928_v46 = vadd.f32 %v896_v40, %v753_v33  ;;  %v547_v47 = vmul.f32 %v1722_v29, %v2185_v28  ;;  %v459_v17 = vmul.f32 %v2152_v1, %v423_v63  ;;  %v632_v18 = vmul.f32 %v2155_v3, %v595_v50 }
  0xff   : > { %1733 = vtanh.f32 %v481_v30  ;;  %v1726_v45 = vpop.eup %1725  ;;  %v722_v48 = vmul.f32 %v1724_v34, %v2189_v31  ;;  %v770_v13 = vsub.f32 %v2276_v25, %v2163_v8 }
 0x100   : > { %1735 = vtanh.f32 %v654_v32  ;;  %v1728_v51 = vpop.eup %1727  ;;  %1526 = vmatmul.msk.f32.gmra.mxu1 %vm937_vm0, %v904_v42  ;;  %v873_v14 = vmul.f32 %v1726_v45, %v2202_v43 }
 0x101   : > { %1737 = vtanh.f32 %v805_v35  ;;  %v1730_v54 = vpop.eup %1729  ;;  %v754_v5 = vadd.f32 %v722_v48, %v547_v47  ;;  %v524_v15 = vmul.f32 %v1728_v51, %v2185_v28 }
 0x102   : > { %v404_v37 = vpop.f32.mrf.mxu3  ;;  %1739 = vtanh.f32 %v458_v39  ;;  %v1732_v62 = vpop.eup %1731  ;;  %1550 = vmatmul.msk.f32.gmra.mxu3 %vm937_vm0, %v928_v46  ;;  %v699_v19 = vmul.f32 %v1730_v54, %v2189_v31  ;;  %v905_v22 = vadd.f32 %v873_v14, %v730_v6 }
 0x103   : > { %v446_v56 = vsub.f32 %v404_v37, %v2144_v59  ;;  %v618_v57 = vsub.f32 %v404_v37, %v2146_v60  ;;  %v2299_v58 = vpop.f32.mrf.mxu0  ;;  %1741 = vtanh.f32 %v631_v41  ;;  %v793_v11 = vsub.f32 %v404_v37, %v2163_v8 }
 0x104   : > { %1743 = vtanh.f32 %v829_v53  ;;  %v897_v12 = vmul.f32 %v1732_v62, %v2202_v43  ;;  %v731_v35 = vadd.f32 %v699_v19, %v524_v15  ;;  %v807_v41 = vmul.f32 %v2165_v9, %v770_v13 }
 0x105   : > { %v1734_v0 = vpop.eup %1733  ;;  %v482_v2 = vmul.f32 %v2152_v1, %v446_v56  ;;  %v655_v4 = vmul.f32 %v2155_v3, %v618_v57  ;;  %v830_v27 = vmul.f32 %v2165_v9, %v793_v11  ;;  %v424_v44 = vsub.f32 %v2299_v58, %v2144_v59 }
 0x106   : > { %v1736_v7 = vpop.eup %1735  ;;  %v929_v21 = vadd.f32 %v897_v12, %v754_v5  ;;  %v548_v23 = vmul.f32 %v1734_v0, %v2185_v28  ;;  %v596_v47 = vsub.f32 %v2299_v58, %v2146_v60 }
 0x107   : > { %1745 = vtanh.f32 %v482_v2  ;;  %v1738_v16 = vpop.eup %1737  ;;  %v723_v24 = vmul.f32 %v1736_v7, %v2189_v31  ;;  %v460_v63 = vmul.f32 %v2152_v1, %v424_v44 }
 0x108   : > { %1747 = vtanh.f32 %v655_v4  ;;  %v1740_v20 = vpop.eup %1739  ;;  %1527 = vmatmul.msk.f32.gmra.mxu1 %vm937_vm0, %v905_v22  ;;  %v874_v46 = vmul.f32 %v1738_v16, %v2202_v43  ;;  %v633_v2 = vmul.f32 %v2155_v3, %v596_v47 }
 0x109   : > { %v1742_v26 = vpop.eup %1741  ;;  %1749 = vtanh.f32 %v806_v10  ;;  %v755_v39 = vadd.f32 %v723_v24, %v548_v23  ;;  %v525_v48 = vmul.f32 %v1740_v20, %v2185_v28  ;;  %v771_v10 = vsub.f32 %v2299_v58, %v2163_v8 }
 0x10a   : > { %v407_v29 = vpop.f32.mrf.mxu3  ;;  %v1744_v34 = vpop.eup %1743  ;;  %1751 = vtanh.f32 %v459_v17  ;;  %1551 = vmatmul.msk.f32.gmra.mxu3 %vm937_vm0, %v929_v21  ;;  %v700_v49 = vmul.f32 %v1742_v26, %v2189_v31  ;;  %v906_v53 = vadd.f32 %v874_v46, %v731_v35 }
 0x10b   : > { %v447_v30 = vsub.f32 %v407_v29, %v2144_v59  ;;  %v619_v32 = vsub.f32 %v407_v29, %v2146_v60  ;;  %v2324_v33 = vpop.f32.mrf.mxu0  ;;  %1753 = vtanh.f32 %v632_v18  ;;  %v794_v42 = vsub.f32 %v407_v29, %v2163_v8 }
 0x10c   : > { %1755 = vtanh.f32 %v830_v27  ;;  %v898_v45 = vmul.f32 %v1744_v34, %v2202_v43  ;;  %v732_v4 = vadd.f32 %v700_v49, %v525_v48  ;;  %v425_v12 = vsub.f32 %v2324_v33, %v2144_v59 }
 0x10d   : > { %v1746_v36 = vpop.eup %1745  ;;  %v483_v25 = vmul.f32 %v2152_v1, %v447_v30  ;;  %v656_v38 = vmul.f32 %v2155_v3, %v619_v32  ;;  %v831_v57 = vmul.f32 %v2165_v9, %v794_v42  ;;  %v597_v15 = vsub.f32 %v2324_v33, %v2146_v60 }
 0x10e   : > { %v1748_v40 = vpop.eup %1747  ;;  %v930_v52 = vadd.f32 %v898_v45, %v755_v39  ;;  %v549_v37 = vmul.f32 %v1746_v36, %v2185_v28  ;;  %v808_v21 = vmul.f32 %v2165_v9, %v771_v10  ;;  %v461_v23 = vmul.f32 %v2152_v1, %v425_v12 }
 0x10f   : > { %1757 = vtanh.f32 %v483_v25  ;;  %v1750_v51 = vpop.eup %1749  ;;  %v724_v54 = vmul.f32 %v1748_v40, %v2189_v31  ;;  %v634_v13 = vmul.f32 %v2155_v3, %v597_v15  ;;  %v772_v34 = vsub.f32 %v2324_v33, %v2163_v8 }
 0x110   : > { %1759 = vtanh.f32 %v656_v38  ;;  %v1752_v56 = vpop.eup %1751  ;;  %1528 = vmatmul.msk.f32.gmra.mxu1 %vm937_vm0, %v906_v53  ;;  %v875_v11 = vmul.f32 %v1750_v51, %v2202_v43 }
 0x111   : > { %v1754_v62 = vpop.eup %1753  ;;  %1761 = vtanh.f32 %v807_v41  ;;  %v756_v6 = vadd.f32 %v724_v54, %v549_v37  ;;  %v526_v17 = vmul.f32 %v1752_v56, %v2185_v28  ;;  %v809_v33 = vmul.f32 %v2165_v9, %v772_v34 }
 0x112   : > { %v1756_v0 = vpop.eup %1755  ;;  %1552 = vmatmul.msk.f32.gmra.mxu3 %vm937_vm0, %v930_v52  ;;  %1763 = vtanh.f32 %v831_v57  ;;  %v907_v16 = vadd.f32 %v875_v11, %v732_v4  ;;  %v701_v20 = vmul.f32 %v1754_v62, %v2189_v31 }
 0x113   : > { %v2344_v50 = vpop.f32.mrf.mxu0  ;;  %1765 = vtanh.f32 %v460_v63  ;;  %v899_v14 = vmul.f32 %v1756_v0, %v2202_v43 }
 0x114   : > { %1767 = vtanh.f32 %v633_v2  ;;  %v733_v30 = vadd.f32 %v701_v20, %v526_v17  ;;  %v426_v35 = vsub.f32 %v2344_v50, %v2144_v59  ;;  %v598_v38 = vsub.f32 %v2344_v50, %v2146_v60 }
 0x115   : > { %v1758_v5 = vpop.eup %1757  ;;  %v931_v18 = vadd.f32 %v899_v14, %v756_v6  ;;  %1769 = vtanh.f32 %v808_v21  ;;  %v773_v52 = vsub.f32 %v2344_v50, %v2163_v8 }
 0x116   : > { %v1760_v7 = vpop.eup %1759  ;;  %v550_v19 = vmul.f32 %v1758_v5, %v2185_v28  ;;  %1771 = vtanh.f32 %v461_v23  ;;  %v462_v44 = vmul.f32 %v2152_v1, %v426_v35  ;;  %v635_v47 = vmul.f32 %v2155_v3, %v598_v38 }
 0x117   : > { %v725_v58 = vmul.f32 %v1760_v7, %v2189_v31  ;;  %v1762_v22 = vpop.eup %1761  ;;  %1773 = vtanh.f32 %v634_v13  ;;  %v810_v63 = vmul.f32 %v2165_v9, %v773_v52 }
 0x118   : > { %1529 = vmatmul.msk.f32.gmra.mxu1 %vm937_vm0, %v907_v16  ;;  %v1764_v26 = vpop.eup %1763  ;;  %v876_v25 = vmul.f32 %v1762_v22, %v2202_v43  ;;  %1775 = vtanh.f32 %v809_v33 }
 0x119   : > { %v1766_v27 = vpop.eup %1765  ;;  %v757_v29 = vadd.f32 %v725_v58, %v550_v19  ;;  %v900_v36 = vmul.f32 %v1764_v26, %v2202_v43  ;;  %1777 = vtanh.f32 %v462_v44 }
 0x11a   : > { %1553 = vmatmul.msk.f32.gmra.mxu3 %vm937_vm0, %v931_v18  ;;  %v1768_v32 = vpop.eup %1767  ;;  %v908_v40 = vadd.f32 %v876_v25, %v733_v30  ;;  %v527_v41 = vmul.f32 %v1766_v27, %v2185_v28  ;;  %1779 = vtanh.f32 %v635_v47 }
 0x11b   : > { %v347_v24 = vpop.f32.mrf.mxu0  ;;  %v932_v39 = vadd.f32 %v900_v36, %v757_v29  ;;  %v702_v42 = vmul.f32 %v1768_v32, %v2189_v31  ;;  %v1770_v46 = vpop.eup %1769  ;;  %1781 = vtanh.f32 %v810_v63 }
 0x11c   : > { %v1772_v48 = vpop.eup %1771  ;;  %v427_v53 = vsub.f32 %v347_v24, %v2144_v59  ;;  %v877_v37 = vmul.f32 %v1770_v46, %v2202_v43  ;;  %v599_v54 = vsub.f32 %v347_v24, %v2146_v60  ;;  %v774_v10 = vsub.f32 %v347_v24, %v2163_v8 }
 0x11d   : > { %v734_v49 = vadd.f32 %v702_v42, %v527_v41  ;;  %v1774_v51 = vpop.eup %1773  ;;  %v528_v57 = vmul.f32 %v1772_v48, %v2185_v28 }
 0x11e   : > { %v703_v62 = vmul.f32 %v1774_v51, %v2189_v31  ;;  %v463_v0 = vmul.f32 %v2152_v1, %v427_v53  ;;  %v1776_v2 = vpop.eup %1775  ;;  %v636_v4 = vmul.f32 %v2155_v3, %v599_v54  ;;  %v811_v18 = vmul.f32 %v2165_v9, %v774_v10 }
 0x11f   : > { %v909_v56 = vadd.f32 %v877_v37, %v734_v49  ;;  %v1778_v5 = vpop.eup %1777  ;;  %v878_v12 = vmul.f32 %v1776_v2, %v2202_v43  ;;  %v1192_v37 = vld [vmem:[%s2672_s4 + $0x8] sm:$0xff] }
 0x120   : > { %1530 = vmatmul.msk.f32.gmra.mxu1 %vm937_vm0, %v908_v40  ;;  %v735_v6 = vadd.f32 %v703_v62, %v528_v57  ;;  %v1780_v7 = vpop.eup %1779  ;;  %1783 = vtanh.f32 %v463_v0  ;;  %v529_v16 = vmul.f32 %v1778_v5, %v2185_v28  ;;  %1555 = vmatpush.xpose.msk.msra.mxu2 %vm937_vm0, %v1192_v37 }
 0x121   : > { %1785 = vtanh.f32 %v636_v4  ;;  %v704_v17 = vmul.f32 %v1780_v7, %v2189_v31  ;;  %v1782_v20 = vpop.eup %1781  ;;  %1612 = vmatpush.xpose.msk.msra.mxu3 %vm937_vm0, %v1192_v37 }
 0x122   : > { %1554 = vmatmul.msk.f32.gmra.mxu3 %vm937_vm0, %v932_v39  ;;  %v910_v15 = vadd.f32 %v878_v12, %v735_v6  ;;  %1787 = vtanh.f32 %v811_v18  ;;  %v879_v27 = vmul.f32 %v1782_v20, %v2202_v43 }
 0x123   : > { %v350_v45 = vpop.f32.mrf.mxu0  ;;  %v736_v23 = vadd.f32 %v704_v17, %v529_v16 }
 0x124   : > { %v428_v11 = vsub.f32 %v350_v45, %v2144_v59  ;;  %v600_v14 = vsub.f32 %v350_v45, %v2146_v60  ;;  %v775_v26 = vsub.f32 %v350_v45, %v2163_v8 }
 0x125   : > { %v911_v30 = vadd.f32 %v879_v27, %v736_v23 }
 0x126   : > { %v464_v19 = vmul.f32 %v2152_v1, %v428_v11  ;;  %v637_v21 = vmul.f32 %v2155_v3, %v600_v14  ;;  %v1784_v22 = vpop.eup %1783  ;;  %v812_v35 = vmul.f32 %v2165_v9, %v775_v26  ;;  %v1191_v11 = vld [vmem:[%s2672_s4] sm:$0xff] }
 0x127   : > { %v1786_v24 = vpop.eup %1785  ;;  %v530_v32 = vmul.f32 %v1784_v22, %v2185_v28  ;;  %1556 = vmatpush.xpose.msk.msra.mxu2 %vm937_vm0, %v1191_v11  ;;  %1613 = vmatpush.xpose.msk.msra.mxu3 %vm937_vm0, %v1191_v11 }
 0x128   : > { %1531 = vmatmul.msk.f32.gmra.mxu1 %vm937_vm0, %v909_v56  ;;  %1789 = vtanh.f32 %v464_v19  ;;  %v705_v34 = vmul.f32 %v1786_v24, %v2189_v31  ;;  %v1788_v38 = vpop.eup %1787 }
 0x129   : > { %1791 = vtanh.f32 %v637_v21  ;;  %v880_v45 = vmul.f32 %v1788_v38, %v2202_v43 }
 0x12a   : > { %v737_v41 = vadd.f32 %v705_v34, %v530_v32  ;;  %1793 = vtanh.f32 %v812_v35 }
 0x12b   : > { %v353_v50 = vpop.f32.mrf.mxu0 }
 0x12c   : > { %v429_v13 = vsub.f32 %v353_v50, %v2144_v59  ;;  %v601_v29 = vsub.f32 %v353_v50, %v2146_v60  ;;  %v776_v33 = vsub.f32 %v353_v50, %v2163_v8  ;;  %v912_v47 = vadd.f32 %v880_v45, %v737_v41 }
 0x12e   : > { %v465_v36 = vmul.f32 %v2152_v1, %v429_v13  ;;  %v638_v39 = vmul.f32 %v2155_v3, %v601_v29  ;;  %v1790_v40 = vpop.eup %1789  ;;  %v813_v51 = vmul.f32 %v2165_v9, %v776_v33 }
 0x12f   : > { %v1792_v42 = vpop.eup %1791  ;;  %v531_v48 = vmul.f32 %v1790_v40, %v2185_v28 }
 0x130   : > { %1532 = vmatmul.msk.f32.gmra.mxu1 %vm937_vm0, %v910_v15  ;;  %1795 = vtanh.f32 %v465_v36  ;;  %v706_v49 = vmul.f32 %v1792_v42, %v2189_v31  ;;  %v1794_v54 = vpop.eup %1793 }
 0x131   : > { %1797 = vtanh.f32 %v638_v39  ;;  %v881_v2 = vmul.f32 %v1794_v54, %v2202_v43 }
 0x132   : > { %v738_v62 = vadd.f32 %v706_v49, %v531_v48  ;;  %1799 = vtanh.f32 %v813_v51 }
 0x133   : > { %v356_v58 = vpop.f32.mrf.mxu0 }
 0x134   : > { %v430_v44 = vsub.f32 %v356_v58, %v2144_v59  ;;  %v602_v46 = vsub.f32 %v356_v58, %v2146_v60  ;;  %v777_v0 = vsub.f32 %v356_v58, %v2163_v8  ;;  %v913_v5 = vadd.f32 %v881_v2, %v738_v62 }
 0x136   : > { %v466_v52 = vmul.f32 %v2152_v1, %v430_v44  ;;  %v639_v56 = vmul.f32 %v2155_v3, %v602_v46  ;;  %v1796_v57 = vpop.eup %1795  ;;  %v814_v10 = vmul.f32 %v2165_v9, %v777_v0 }
 0x137   : > { %v1798_v63 = vpop.eup %1797  ;;  %v532_v6 = vmul.f32 %v1796_v57, %v2185_v28 }
 0x138   : > { %1533 = vmatmul.msk.f32.gmra.mxu1 %vm937_vm0, %v911_v30  ;;  %1801 = vtanh.f32 %v466_v52  ;;  %v707_v7 = vmul.f32 %v1798_v63, %v2189_v31  ;;  %v1800_v15 = vpop.eup %1799 }
 0x139   : > { %1803 = vtanh.f32 %v639_v56  ;;  %v882_v21 = vmul.f32 %v1800_v15, %v2202_v43 }
 0x13a   : > { %v739_v18 = vadd.f32 %v707_v7, %v532_v6  ;;  %1805 = vtanh.f32 %v814_v10 }
 0x13b   : > { %v359_v25 = vpop.f32.mrf.mxu0 }
 0x13c   : > { %v431_v50 = vsub.f32 %v359_v25, %v2144_v59  ;;  %v603_v4 = vsub.f32 %v359_v25, %v2146_v60  ;;  %v778_v58 = vsub.f32 %v359_v25, %v2163_v8  ;;  %v914_v23 = vadd.f32 %v882_v21, %v739_v18 }
 0x13e   : > { %v467_v12 = vmul.f32 %v2152_v1, %v431_v50  ;;  %v640_v16 = vmul.f32 %v2155_v3, %v603_v4  ;;  %v1802_v17 = vpop.eup %1801  ;;  %v815_v13 = vmul.f32 %v2165_v9, %v778_v58 }
 0x13f   : > { %v1804_v19 = vpop.eup %1803  ;;  %v533_v24 = vmul.f32 %v1802_v17, %v2185_v28 }
 0x140   : > { %1534 = vmatmul.msk.f32.gmra.mxu1 %vm937_vm0, %v912_v47  ;;  %1807 = vtanh.f32 %v467_v12  ;;  %v708_v26 = vmul.f32 %v1804_v19, %v2189_v31  ;;  %v1806_v29 = vpop.eup %1805 }
 0x141   : > { %1809 = vtanh.f32 %v640_v16  ;;  %v883_v40 = vmul.f32 %v1806_v29, %v2202_v43 }
 0x142   : > { %v740_v36 = vadd.f32 %v708_v26, %v533_v24  ;;  %1811 = vtanh.f32 %v815_v13 }
 0x143   : > { %v362_v53 = vpop.f32.mrf.mxu0 }
 0x144   : > { %v432_v20 = vsub.f32 %v362_v53, %v2144_v59  ;;  %v604_v22 = vsub.f32 %v362_v53, %v2146_v60  ;;  %v779_v35 = vsub.f32 %v362_v53, %v2163_v8  ;;  %v915_v42 = vadd.f32 %v883_v40, %v740_v36 }
 0x146   : > { %v468_v27 = vmul.f32 %v2152_v1, %v432_v20  ;;  %v641_v30 = vmul.f32 %v2155_v3, %v604_v22  ;;  %v1808_v34 = vpop.eup %1807  ;;  %v816_v41 = vmul.f32 %v2165_v9, %v779_v35 }
 0x147   : > { %v1810_v25 = vpop.eup %1809  ;;  %v534_v33 = vmul.f32 %v1808_v34, %v2185_v28 }
 0x148   : > { %1535 = vmatmul.msk.f32.gmra.mxu1 %vm937_vm0, %v913_v5  ;;  %1813 = vtanh.f32 %v468_v27  ;;  %v709_v44 = vmul.f32 %v1810_v25, %v2189_v31  ;;  %v1812_v47 = vpop.eup %1811 }
 0x149   : > { %1815 = vtanh.f32 %v641_v30  ;;  %v884_v54 = vmul.f32 %v1812_v47, %v2202_v43 }
 0x14a   : > { %1817 = vtanh.f32 %v816_v41  ;;  %v741_v51 = vadd.f32 %v709_v44, %v534_v33 }
 0x14b   : > { %v365_v14 = vpop.f32.mrf.mxu0 }
 0x14c   : > { %v433_v38 = vsub.f32 %v365_v14, %v2144_v59  ;;  %v605_v39 = vsub.f32 %v365_v14, %v2146_v60  ;;  %v780_v49 = vsub.f32 %v365_v14, %v2163_v8  ;;  %v916_v62 = vadd.f32 %v884_v54, %v741_v51 }
 0x14e   : > { %v469_v45 = vmul.f32 %v2152_v1, %v433_v38  ;;  %v642_v46 = vmul.f32 %v2155_v3, %v605_v39  ;;  %v1814_v48 = vpop.eup %1813  ;;  %v817_v57 = vmul.f32 %v2165_v9, %v780_v49 }
 0x14f   : > { %v1816_v52 = vpop.eup %1815  ;;  %v535_v63 = vmul.f32 %v1814_v48, %v2185_v28 }
 0x150   : > { %1536 = vmatmul.msk.f32.gmra.mxu1 %vm937_vm0, %v914_v23  ;;  %1819 = vtanh.f32 %v469_v45  ;;  %v710_v0 = vmul.f32 %v1816_v52, %v2189_v31  ;;  %v1818_v50 = vpop.eup %1817 }
 0x151   : > { %1821 = vtanh.f32 %v642_v46  ;;  %v885_v14 = vmul.f32 %v1818_v50, %v2202_v43 }
 0x152   : > { %1823 = vtanh.f32 %v817_v57  ;;  %v742_v10 = vadd.f32 %v710_v0, %v535_v63 }
 0x153   : > { %v368_v32 = vpop.f32.mrf.mxu0 }
 0x154   : > { %v434_v37 = vsub.f32 %v368_v32, %v2144_v59  ;;  %v606_v56 = vsub.f32 %v368_v32, %v2146_v60  ;;  %v781_v7 = vsub.f32 %v368_v32, %v2163_v8  ;;  %v917_v20 = vadd.f32 %v885_v14, %v742_v10 }
 0x156   : > { %v470_v2 = vmul.f32 %v2152_v1, %v434_v37  ;;  %v1820_v4 = vpop.eup %1819  ;;  %v643_v5 = vmul.f32 %v2155_v3, %v606_v56  ;;  %v818_v19 = vmul.f32 %v2165_v9, %v781_v7 }
 0x157   : > { %v1822_v6 = vpop.eup %1821  ;;  %v536_v17 = vmul.f32 %v1820_v4, %v2185_v28 }
 0x158   : > { %1537 = vmatmul.msk.f32.gmra.mxu1 %vm937_vm0, %v915_v42  ;;  %1825 = vtanh.f32 %v470_v2  ;;  %v711_v18 = vmul.f32 %v1822_v6, %v2189_v31  ;;  %v1824_v22 = vpop.eup %1823 }
 0x159   : > { %1827 = vtanh.f32 %v643_v5  ;;  %v886_v29 = vmul.f32 %v1824_v22, %v2202_v43 }
 0x15a   : > { %v743_v24 = vadd.f32 %v711_v18, %v536_v17  ;;  %1829 = vtanh.f32 %v818_v19 }
 0x15b   : > { %v371_v53 = vpop.f32.mrf.mxu0 }
 0x15c   : > { %v435_v11 = vsub.f32 %v371_v53, %v2144_v59  ;;  %v607_v12 = vsub.f32 %v371_v53, %v2146_v60  ;;  %v782_v13 = vsub.f32 %v371_v53, %v2163_v8  ;;  %v918_v35 = vadd.f32 %v886_v29, %v743_v24 }
 0x15e   : > { %v471_v21 = vmul.f32 %v2152_v1, %v435_v11  ;;  %v644_v23 = vmul.f32 %v2155_v3, %v607_v12  ;;  %v1826_v26 = vpop.eup %1825  ;;  %v819_v36 = vmul.f32 %v2165_v9, %v782_v13 }
 0x15f   : > { %v1828_v27 = vpop.eup %1827  ;;  %v537_v38 = vmul.f32 %v1826_v26, %v2185_v28 }
 0x160   : > { %1538 = vmatmul.msk.f32.gmra.mxu1 %vm937_vm0, %v916_v62  ;;  %1831 = vtanh.f32 %v471_v21  ;;  %v712_v39 = vmul.f32 %v1828_v27, %v2189_v31  ;;  %v1830_v41 = vpop.eup %1829 }
 0x161   : > { %1833 = vtanh.f32 %v644_v23  ;;  %v887_v51 = vmul.f32 %v1830_v41, %v2202_v43 }
 0x162   : > { %1835 = vtanh.f32 %v819_v36  ;;  %v744_v47 = vadd.f32 %v712_v39, %v537_v38  ;;  %v439_v39 = vsub.f32 %v2134_v55, %v2144_v59 }
 0x163   : > { %v374_v15 = vpop.f32.mrf.mxu0 }
 0x164   : > { %v436_v30 = vsub.f32 %v374_v15, %v2144_v59  ;;  %v608_v32 = vsub.f32 %v374_v15, %v2146_v60  ;;  %v783_v46 = vsub.f32 %v374_v15, %v2163_v8  ;;  %v919_v62 = vadd.f32 %v887_v51, %v744_v47 }
 0x165   : > { %v1063_v16 = vpop.f32.mrf.mxu1 }
 0x166   : > { %v1159_v58 = vmax.f32 %v1063_v16, 0.0  ;;  %v472_v42 = vmul.f32 %v2152_v1, %v436_v30  ;;  %v1832_v33 = vpop.eup %1831  ;;  %v645_v44 = vmul.f32 %v2155_v3, %v608_v32  ;;  %v820_v56 = vmul.f32 %v2165_v9, %v783_v46 }
 0x167   : > { %v1834_v45 = vpop.eup %1833  ;;  %v538_v37 = vmul.f32 %v1832_v33, %v2185_v28 }
 0x168   : > { %1539 = vmatmul.msk.f32.gmra.mxu1 %vm937_vm0, %v917_v20  ;;  %1557 = vmatmul.msk.f32.vlgmr.msra.gmra.mxu2 %vm937_vm0, %v1159_v58  ;;  %1837 = vtanh.f32 %v472_v42  ;;  %v713_v54 = vmul.f32 %v1834_v45, %v2189_v31  ;;  %v1836_v0 = vpop.eup %1835 }
 0x169   : > { %1839 = vtanh.f32 %v645_v44  ;;  %v888_v10 = vmul.f32 %v1836_v0, %v2202_v43  ;;  %v786_v44 = vsub.f32 %v2134_v55, %v2163_v8  ;;  %v612_v0 = vsub.f32 %v2148_v61, %v2146_v60 }
 0x16a   : > { %v745_v5 = vadd.f32 %v713_v54, %v538_v37  ;;  %1841 = vtanh.f32 %v820_v56 }
 0x16b   : > { %v377_v40 = vpop.f32.mrf.mxu0  ;;  %v823_v51 = vmul.f32 %v2165_v9, %v786_v44 }
 0x16c   : > { %v437_v48 = vsub.f32 %v377_v40, %v2144_v59  ;;  %v609_v49 = vsub.f32 %v377_v40, %v2146_v60  ;;  %v784_v2 = vsub.f32 %v377_v40, %v2163_v8  ;;  %v920_v17 = vadd.f32 %v888_v10, %v745_v5 }
 0x16d   : > { %v1066_v34 = vpop.f32.mrf.mxu1  ;;  %v611_v40 = vsub.f32 %v2134_v55, %v2146_v60 }
 0x16e   : > { %v1160_v25 = vmax.f32 %v1066_v34, 0.0  ;;  %v473_v63 = vmul.f32 %v2152_v1, %v437_v48  ;;  %v646_v50 = vmul.f32 %v2155_v3, %v609_v49  ;;  %v1838_v6 = vpop.eup %1837  ;;  %v821_v12 = vmul.f32 %v2165_v9, %v784_v2 }
 0x16f   : > { %v1840_v7 = vpop.eup %1839  ;;  %v539_v58 = vmul.f32 %v1838_v6, %v2185_v28  ;;  %v648_v33 = vmul.f32 %v2155_v3, %v611_v40  ;;  %v475_v48 = vmul.f32 %v2152_v1, %v439_v39  ;;  %v649_v2 = vmul.f32 %v2155_v3, %v612_v0 }
 0x170   : > { %1540 = vmatmul.msk.f32.gmra.mxu1 %vm937_vm0, %v918_v35  ;;  %1558 = vmatmul.msk.f32.gmra.mxu2 %vm937_vm0, %v1160_v25  ;;  %1843 = vtanh.f32 %v473_v63  ;;  %v714_v20 = vmul.f32 %v1840_v7, %v2189_v31  ;;  %v1842_v21 = vpop.eup %1841  ;;  %v440_v63 = vsub.f32 %v2148_v61, %v2144_v59 }
 0x171   : > { %1845 = vtanh.f32 %v646_v50  ;;  %v889_v29 = vmul.f32 %v1842_v21, %v2202_v43 }
 0x172   : > { %1847 = vtanh.f32 %v821_v12  ;;  %v746_v13 = vadd.f32 %v714_v20, %v539_v58 }
 0x173   : > { %v380_v4 = vpop.f32.mrf.mxu0 }
 0x174   : > { %v438_v11 = vsub.f32 %v380_v4, %v2144_v59  ;;  %v610_v14 = vsub.f32 %v380_v4, %v2146_v60  ;;  %v785_v27 = vsub.f32 %v380_v4, %v2163_v8  ;;  %v921_v38 = vadd.f32 %v889_v29, %v746_v13 }
 0x175   : > { %v2497_v52 = vpop.f32.mrf.mxu3  ;;  %v1069_v53 = vpop.f32.mrf.mxu1  ;;  %v787_v4 = vsub.f32 %v2148_v61, %v2163_v8  ;;  %v476_v59 = vmul.f32 %v2152_v1, %v440_v63 }
 0x176   : > { %v1161_v57 = vmax.f32 %v1069_v53, 0.0  ;;  %v474_v22 = vmul.f32 %v2152_v1, %v438_v11  ;;  %v1844_v23 = vpop.eup %1843  ;;  %v647_v24 = vmul.f32 %v2155_v3, %v610_v14  ;;  %v822_v41 = vmul.f32 %v2165_v9, %v785_v27 }
 0x177   : > { %v1846_v26 = vpop.eup %1845  ;;  %v540_v34 = vmul.f32 %v1844_v23, %v2185_v28  ;;  %v824_v10 = vmul.f32 %v2165_v9, %v787_v4 }
 0x178   : > { %1541 = vmatmul.msk.f32.gmra.mxu1 %vm937_vm0, %v919_v62  ;;  %1559 = vmatmul.msk.f32.gmra.mxu2 %vm937_vm0, %v1161_v57  ;;  %1849 = vtanh.f32 %v474_v22  ;;  %v715_v35 = vmul.f32 %v1846_v26, %v2189_v31  ;;  %v1848_v42 = vpop.eup %1847 }
 0x179   : > { %1851 = vtanh.f32 %v647_v24  ;;  %v890_v49 = vmul.f32 %v1848_v42, %v2202_v43 }
 0x17a   : > { %v747_v45 = vadd.f32 %v715_v35, %v540_v34  ;;  %1853 = vtanh.f32 %v822_v41 }
 0x17b   : > { %1855 = vtanh.f32 %v648_v33 }
 0x17c   : > { %v922_v54 = vadd.f32 %v890_v49, %v747_v45  ;;  %1857 = vtanh.f32 %v475_v48 }
 0x17d   : > { %v1141_v15 = vpop.f32.mrf.mxu3  ;;  %v1072_v16 = vpop.f32.mrf.mxu1  ;;  %1859 = vtanh.f32 %v823_v51 }
 0x17e   : > { %v1185_v18 = vmax.f32 %v1141_v15, 0.0  ;;  %v1162_v19 = vmax.f32 %v1072_v16, 0.0  ;;  %v1850_v46 = vpop.eup %1849  ;;  %1861 = vtanh.f32 %v649_v2 }
 0x17f   : > { %v1852_v47 = vpop.eup %1851  ;;  %v541_v55 = vmul.f32 %v1850_v46, %v2185_v28  ;;  %1863 = vtanh.f32 %v476_v59 }
 0x180   : > { %1583 = vmatmul.msk.f32.vlgmr.msra.gmra.mxu3 %vm937_vm0, %v1185_v18  ;;  %1542 = vmatmul.msk.f32.gmra.mxu1 %vm937_vm0, %v920_v17  ;;  %v716_v62 = vmul.f32 %v1852_v47, %v2189_v31  ;;  %v1854_v50 = vpop.eup %1853  ;;  %1865 = vtanh.f32 %v824_v10 }
 0x181   : > { %1560 = vmatmul.msk.f32.gmra.mxu2 %vm937_vm0, %v1162_v19  ;;  %v1856_v6 = vpop.eup %1855  ;;  %v891_v7 = vmul.f32 %v1854_v50, %v2202_v43 }
 0x182   : > { %v748_v5 = vadd.f32 %v716_v62, %v541_v55  ;;  %v1858_v60 = vpop.eup %1857  ;;  %v717_v61 = vmul.f32 %v1856_v6, %v2189_v31 }
 0x183   : > { %v1860_v8 = vpop.eup %1859  ;;  %v542_v1 = vmul.f32 %v1858_v60, %v2185_v28 }
 0x184   : > { %v923_v15 = vadd.f32 %v891_v7, %v748_v5  ;;  %v892_v9 = vmul.f32 %v1860_v8, %v2202_v43  ;;  %v1862_v17 = vpop.eup %1861 }
 0x185   : > { %v1144_v30 = vpop.f32.mrf.mxu3  ;;  %v1075_v32 = vpop.f32.mrf.mxu1  ;;  %v749_v16 = vadd.f32 %v717_v61, %v542_v1  ;;  %v718_v23 = vmul.f32 %v1862_v17, %v2189_v31 }
 0x186   : > { %v1186_v36 = vmax.f32 %v1144_v30, 0.0  ;;  %v1163_v25 = vmax.f32 %v1075_v32, 0.0  ;;  %v1864_v18 = vpop.eup %1863 }
 0x187   : > { %v924_v22 = vadd.f32 %v892_v9, %v749_v16  ;;  %v1866_v24 = vpop.eup %1865  ;;  %v543_v26 = vmul.f32 %v1864_v18, %v2185_v28  ;;  %v1184_v18 = vmax.f32 %v2497_v52, 0.0 }
 0x188   : > { %1584 = vmatmul.msk.f32.gmra.mxu3 %vm937_vm0, %v1186_v36  ;;  %1543 = vmatmul.msk.f32.gmra.mxu1 %vm937_vm0, %v921_v38  ;;  %v893_v27 = vmul.f32 %v1866_v24, %v2202_v43 }
 0x189   : > { %1561 = vmatmul.msk.f32.gmra.mxu2 %vm937_vm0, %v1163_v25  ;;  %v750_v13 = vadd.f32 %v718_v23, %v543_v26 }
 0x18b   : > { %v925_v35 = vadd.f32 %v893_v27, %v750_v13 }
 0x18d   : > { %v1147_v53 = vpop.f32.mrf.mxu3  ;;  %v1078_v37 = vpop.f32.mrf.mxu1 }
 0x18e   : > { %v1187_v56 = vmax.f32 %v1147_v53, 0.0  ;;  %v1164_v57 = vmax.f32 %v1078_v37, 0.0 }
 0x190   : > { %1585 = vmatmul.msk.f32.gmra.mxu3 %vm937_vm0, %v1187_v56  ;;  %1544 = vmatmul.msk.f32.gmra.mxu1 %vm937_vm0, %v922_v54 }
 0x191   : > { %1562 = vmatmul.msk.f32.gmra.mxu2 %vm937_vm0, %v1164_v57 }
 0x195   : > { %v1150_v11 = vpop.f32.mrf.mxu3  ;;  %v1081_v12 = vpop.f32.mrf.mxu1 }
 0x196   : > { %v1188_v14 = vmax.f32 %v1150_v11, 0.0  ;;  %v1165_v3 = vmax.f32 %v1081_v12, 0.0 }
 0x198   : > { %1586 = vmatmul.msk.f32.gmra.mxu3 %vm937_vm0, %v1188_v14  ;;  %1545 = vmatmul.msk.f32.gmra.mxu1 %vm937_vm0, %v923_v15 }
 0x199   : > { %1563 = vmatmul.msk.f32.gmra.mxu2 %vm937_vm0, %v1165_v3 }
 0x19d   : > { %v1153_v19 = vpop.f32.mrf.mxu3  ;;  %v1084_v58 = vpop.f32.mrf.mxu1 }
 0x19e   : > { %v1189_v20 = vmax.f32 %v1153_v19, 0.0  ;;  %v1166_v21 = vmax.f32 %v1084_v58, 0.0 }
 0x1a0   : > { %1587 = vmatmul.msk.f32.gmra.mxu3 %vm937_vm0, %v1189_v20  ;;  %1546 = vmatmul.msk.f32.gmra.mxu1 %vm937_vm0, %v924_v22 }
 0x1a1   : > { %1564 = vmatmul.msk.f32.gmra.mxu2 %vm937_vm0, %v1166_v21 }
 0x1a5   : > { %v1156_v29 = vpop.f32.mrf.mxu3  ;;  %v1087_v30 = vpop.f32.mrf.mxu1 }
 0x1a6   : > { %v1190_v32 = vmax.f32 %v1156_v29, 0.0  ;;  %v1167_v34 = vmax.f32 %v1087_v30, 0.0 }
 0x1a8   : > { %1588 = vmatmul.msk.f32.gmra.mxu3 %vm937_vm0, %v1190_v32  ;;  %1547 = vmatmul.msk.f32.gmra.mxu1 %vm937_vm0, %v925_v35 }
 0x1a9   : > { %1565 = vmatmul.msk.f32.gmra.mxu2 %vm937_vm0, %v1167_v34 }
 0x1ad   : > { %v1090_v31 = vpop.f32.mrf.mxu1 }
 0x1ae   : > { %v1168_v36 = vmax.f32 %v1090_v31, 0.0 }
 0x1b1   : > { %1566 = vmatmul.msk.f32.gmra.mxu2 %vm937_vm0, %v1168_v36 }
 0x1b5   : > { %v1093_v28 = vpop.f32.mrf.mxu1 }
 0x1b6   : > { %v1169_v25 = vmax.f32 %v1093_v28, 0.0 }
 0x1b9   : > { %1567 = vmatmul.msk.f32.gmra.mxu2 %vm937_vm0, %v1169_v25 }
 0x1bd   : > { %v1096_v43 = vpop.f32.mrf.mxu1 }
 0x1be   : > { %v1170_v38 = vmax.f32 %v1096_v43, 0.0 }
 0x1c1   : > { %1568 = vmatmul.msk.f32.gmra.mxu2 %vm937_vm0, %v1170_v38 }
 0x1c5   : > { %v1099_v39 = vpop.f32.mrf.mxu1 }
 0x1c6   : > { %v1171_v40 = vmax.f32 %v1099_v39, 0.0 }
 0x1c9   : > { %1569 = vmatmul.msk.f32.gmra.mxu2 %vm937_vm0, %v1171_v40 }
 0x1cd   : > { %v1102_v41 = vpop.f32.mrf.mxu1 }
 0x1ce   : > { %v1172_v42 = vmax.f32 %v1102_v41, 0.0 }
 0x1d1   : > { %1570 = vmatmul.msk.f32.gmra.mxu2 %vm937_vm0, %v1172_v42 }
 0x1d5   : > { %v1105_v33 = vpop.f32.mrf.mxu1 }
 0x1d6   : > { %v1173_v44 = vmax.f32 %v1105_v33, 0.0 }
 0x1d9   : > { %1571 = vmatmul.msk.f32.gmra.mxu2 %vm937_vm0, %v1173_v44 }
 0x1dd   : > { %v1108_v45 = vpop.f32.mrf.mxu1 }
 0x1de   : > { %v1174_v46 = vmax.f32 %v1108_v45, 0.0 }
 0x1e1   : > { %1572 = vmatmul.msk.f32.gmra.mxu2 %vm937_vm0, %v1174_v46 }
 0x1e5   : > { %v1111_v47 = vpop.f32.mrf.mxu1 }
 0x1e6   : > { %v1175_v48 = vmax.f32 %v1111_v47, 0.0 }
 0x1e9   : > { %1573 = vmatmul.msk.f32.gmra.mxu2 %vm937_vm0, %v1175_v48 }
 0x1eb   : > { %v1312_v49 = vpop.f32.mrf.mxu2 }
 0x1ec   : > { %1409 = vst.msk [vmem:[%s2579_s16] sm:$0xff] %vm1408_vm1, %v1312_v49 }
 0x1ed   : > { %v1114_v51 = vpop.f32.mrf.mxu1 }
 0x1ee   : > { %v1176_v53 = vmax.f32 %v1114_v51, 0.0 }
 0x1f1   : > { %1574 = vmatmul.msk.f32.gmra.mxu2 %vm937_vm0, %v1176_v53 }
 0x1f3   : > { %v1315_v37 = vpop.f32.mrf.mxu2 }
 0x1f4   : > { %1410 = vst.msk [vmem:[%s2579_s16 + $0x8] sm:$0xff] %vm1408_vm1, %v1315_v37 }
 0x1f5   : > { %v1117_v54 = vpop.f32.mrf.mxu1 }
 0x1f6   : > { %v1177_v56 = vmax.f32 %v1117_v54, 0.0 }
 0x1f9   : > { %1575 = vmatmul.msk.f32.gmra.mxu2 %vm937_vm0, %v1177_v56 }
 0x1fb   : > { %v1318_v57 = vpop.f32.mrf.mxu2 }
 0x1fc   : > { %1411 = vst.msk [vmem:[%s2579_s16 + $0x10] sm:$0xff] %vm1408_vm1, %v1318_v57 }
 0x1fd   : > { %v1120_v55 = vpop.f32.mrf.mxu1 }
 0x1fe   : > { %v1178_v62 = vmax.f32 %v1120_v55, 0.0 }
 0x201   : > { %1576 = vmatmul.msk.f32.gmra.mxu2 %vm937_vm0, %v1178_v62 }
 0x203   : > { %v1390_v63 = vpop.f32.mrf.mxu3 }
 0x204   : > { %1435 = vst.msk [vmem:[%s2579_s16 + $0xd0] sm:$0xff] %vm1408_vm1, %v1390_v63  ;;  %v1321_v0 = vpop.f32.mrf.mxu2 }
 0x205   : > { %1412 = vst.msk [vmem:[%s2579_s16 + $0x18] sm:$0xff] %vm1408_vm1, %v1321_v0  ;;  %v1123_v50 = vpop.f32.mrf.mxu1 }
 0x206   : > { %v1179_v2 = vmax.f32 %v1123_v50, 0.0 }
 0x209   : > { %1577 = vmatmul.msk.f32.gmra.mxu2 %vm937_vm0, %v1179_v2 }
 0x20b   : > { %v1393_v4 = vpop.f32.mrf.mxu3 }
 0x20c   : > { %1436 = vst.msk [vmem:[%s2579_s16 + $0xd8] sm:$0xff] %vm1408_vm1, %v1393_v4  ;;  %v1324_v5 = vpop.f32.mrf.mxu2 }
 0x20d   : > { %1413 = vst.msk [vmem:[%s2579_s16 + $0x20] sm:$0xff] %vm1408_vm1, %v1324_v5  ;;  %v1126_v6 = vpop.f32.mrf.mxu1 }
 0x20e   : > { %v1180_v59 = vmax.f32 %v1126_v6, 0.0 }
 0x211   : > { %1578 = vmatmul.msk.f32.gmra.mxu2 %vm937_vm0, %v1180_v59 }
 0x213   : > { %v1396_v7 = vpop.f32.mrf.mxu3 }
 0x214   : > { %1437 = vst.msk [vmem:[%s2579_s16 + $0xe0] sm:$0xff] %vm1408_vm1, %v1396_v7  ;;  %v1327_v60 = vpop.f32.mrf.mxu2 }
 0x215   : > { %1414 = vst.msk [vmem:[%s2579_s16 + $0x28] sm:$0xff] %vm1408_vm1, %v1327_v60  ;;  %v1129_v10 = vpop.f32.mrf.mxu1 }
 0x216   : > { %v1181_v11 = vmax.f32 %v1129_v10, 0.0 }
 0x219   : > { %1579 = vmatmul.msk.f32.gmra.mxu2 %vm937_vm0, %v1181_v11 }
 0x21b   : > { %v1399_v12 = vpop.f32.mrf.mxu3 }
 0x21c   : > { %1438 = vst.msk [vmem:[%s2579_s16 + $0xe8] sm:$0xff] %vm1408_vm1, %v1399_v12  ;;  %v1330_v14 = vpop.f32.mrf.mxu2 }
 0x21d   : > { %1415 = vst.msk [vmem:[%s2579_s16 + $0x30] sm:$0xff] %vm1408_vm1, %v1330_v14  ;;  %v1132_v3 = vpop.f32.mrf.mxu1 }
 0x21e   : > { %v1182_v15 = vmax.f32 %v1132_v3, 0.0 }
 0x221   : > { %1580 = vmatmul.msk.f32.gmra.mxu2 %vm937_vm0, %v1182_v15 }
 0x223   : > { %v1402_v61 = vpop.f32.mrf.mxu3 }
 0x224   : > { %1439 = vst.msk [vmem:[%s2579_s16 + $0xf0] sm:$0xff] %vm1408_vm1, %v1402_v61  ;;  %v1333_v8 = vpop.f32.mrf.mxu2 }
 0x225   : > { %1416 = vst.msk [vmem:[%s2579_s16 + $0x38] sm:$0xff] %vm1408_vm1, %v1333_v8  ;;  %v1135_v1 = vpop.f32.mrf.mxu1 }
 0x226   : > { %v1183_v16 = vmax.f32 %v1135_v1, 0.0 }
 0x229   : > { %1581 = vmatmul.msk.f32.gmra.mxu2 %vm937_vm0, %v1183_v16 }
 0x22b   : > { %v1405_v9 = vpop.f32.mrf.mxu3 }
 0x22c   : > { %1440 = vst.msk [vmem:[%s2579_s16 + $0xf8] sm:$0xff] %vm1408_vm1, %v1405_v9  ;;  %v1336_v17 = vpop.f32.mrf.mxu2 }
 0x22d   : > { %1417 = vst.msk [vmem:[%s2579_s16 + $0x40] sm:$0xff] %vm1408_vm1, %v1336_v17 }
 0x231   : > { %1582 = vmatmul.msk.f32.gmra.mxu2 %vm937_vm0, %v1184_v18 }
 0x234   : > { %v1339_v19 = vpop.f32.mrf.mxu2 }
 0x235   : > { %1418 = vst.msk [vmem:[%s2579_s16 + $0x48] sm:$0xff] %vm1408_vm1, %v1339_v19 }
 0x23c   : > { %v1342_v58 = vpop.f32.mrf.mxu2 }
 0x23d   : > { %1419 = vst.msk [vmem:[%s2579_s16 + $0x50] sm:$0xff] %vm1408_vm1, %v1342_v58 }
 0x244   : > { %v1345_v20 = vpop.f32.mrf.mxu2 }
 0x245   : > { %1420 = vst.msk [vmem:[%s2579_s16 + $0x58] sm:$0xff] %vm1408_vm1, %v1345_v20 }
 0x24c   : > { %v1348_v21 = vpop.f32.mrf.mxu2 }
 0x24d   : > { %1421 = vst.msk [vmem:[%s2579_s16 + $0x60] sm:$0xff] %vm1408_vm1, %v1348_v21 }
 0x254   : > { %v1351_v52 = vpop.f32.mrf.mxu2 }
 0x255   : > { %1422 = vst.msk [vmem:[%s2579_s16 + $0x68] sm:$0xff] %vm1408_vm1, %v1351_v52 }
 0x25c   : > { %v1354_v22 = vpop.f32.mrf.mxu2 }
 0x25d   : > { %1423 = vst.msk [vmem:[%s2579_s16 + $0x70] sm:$0xff] %vm1408_vm1, %v1354_v22 }
 0x264   : > { %v1357_v23 = vpop.f32.mrf.mxu2 }
 0x265   : > { %1424 = vst.msk [vmem:[%s2579_s16 + $0x78] sm:$0xff] %vm1408_vm1, %v1357_v23 }
 0x26c   : > { %v1360_v24 = vpop.f32.mrf.mxu2 }
 0x26d   : > { %1425 = vst.msk [vmem:[%s2579_s16 + $0x80] sm:$0xff] %vm1408_vm1, %v1360_v24 }
 0x274   : > { %v1363_v26 = vpop.f32.mrf.mxu2 }
 0x275   : > { %1426 = vst.msk [vmem:[%s2579_s16 + $0x88] sm:$0xff] %vm1408_vm1, %v1363_v26 }
 0x27c   : > { %v1366_v13 = vpop.f32.mrf.mxu2 }
 0x27d   : > { %1427 = vst.msk [vmem:[%s2579_s16 + $0x90] sm:$0xff] %vm1408_vm1, %v1366_v13 }
 0x284   : > { %v1369_v27 = vpop.f32.mrf.mxu2 }
 0x285   : > { %1428 = vst.msk [vmem:[%s2579_s16 + $0x98] sm:$0xff] %vm1408_vm1, %v1369_v27 }
 0x28c   : > { %v1372_v29 = vpop.f32.mrf.mxu2 }
 0x28d   : > { %1429 = vst.msk [vmem:[%s2579_s16 + $0xa0] sm:$0xff] %vm1408_vm1, %v1372_v29 }
 0x294   : > { %v1375_v30 = vpop.f32.mrf.mxu2 }
 0x295   : > { %1430 = vst.msk [vmem:[%s2579_s16 + $0xa8] sm:$0xff] %vm1408_vm1, %v1375_v30 }
 0x29c   : > { %v1378_v32 = vpop.f32.mrf.mxu2 }
 0x29d   : > { %1431 = vst.msk [vmem:[%s2579_s16 + $0xb0] sm:$0xff] %vm1408_vm1, %v1378_v32 }
 0x2a4   : > { %v1381_v34 = vpop.f32.mrf.mxu2 }
 0x2a5   : > { %1432 = vst.msk [vmem:[%s2579_s16 + $0xb8] sm:$0xff] %vm1408_vm1, %v1381_v34 }
 0x2ac   : > { %v1384_v35 = vpop.f32.mrf.mxu2 }
 0x2ad   : > { %1433 = vst.msk [vmem:[%s2579_s16 + $0xc0] sm:$0xff] %vm1408_vm1, %v1384_v35 }
 0x2b4   : > { %v1387_v31 = vpop.f32.mrf.mxu2 }
 0x2b5   : > { %1434 = vst.msk [vmem:[%s2579_s16 + $0xc8] sm:$0xff] %vm1408_vm1, %v1387_v31 }
 0x2b6 PF: > { %p15_p7 = scmp.ge.s32.totalorder %s1987_s23, 4   ;;  %s2677_s18 = smov %s1923_s19 }
 0x2b7   : > { %s2678_s19 = smov %s1927_s20  ;;  %s2679_s20 = smov %s1997_s26 }
 0x2b8   : > { %s2680_s21 = smov %s1987_s23  ;;  %17 = sbr.rel (!%p15_p7) target bundleno = 3 (0x3), region = 80 }
 0x2bd   :  { %1463 = vsyncpa [#allocation3], 1 }
 0x2be   :  { %1465 = vsyncpa [#allocation3 + $0x1], 1 }

</bundles_post_ra>
